<compile_context>
chip_gen: v6e
topology: v6e:2x2x1
jax: 0.10.0
libtpu: 0.0.40
codegen_flags: <defaults>
</compile_context>

<pallas_src>
import functools

import jax
import jax.numpy as jnp
from jax import lax
from jax.experimental import pallas as pl
from jax.experimental.pallas import tpu as pltpu


# Finite large-negative mask value; softmax turns masked scores into exact 0,
# matching torch.masked_fill(-inf) + softmax for a causal mask (no fully-masked
# row exists, so no NaN-vs-uniform divergence).
_MASK_VALUE = -0.7 * float(jnp.finfo(jnp.float32).max)


def _attention_kernel(x_ref, wq_ref, wk_ref, wv_ref, wo_ref, bo_ref, o_ref, *,
                      scale: float):
    # x_ref:  (1, N, dim)          one batch element
    # wq/wk/wv_ref: (H, dim, D)    per-head projection weights (pre-laid-out)
    # wo_ref: (H, D, dim)          per-head output projection weights
    # bo_ref: (1, dim)
    # o_ref:  (1, N, dim)
    x = x_ref[0]                                    # (N, dim)
    H, dim, D = wq_ref.shape
    N = x.shape[0]

    # Broadcast x over heads once so `h` is a true dot_general batch dim; the
    # projections then produce q/k/v already in (H, N, D) layout with no
    # 64-lane slicing of a fused (N, 3*inner) tensor.
    xh = jnp.broadcast_to(x, (H, N, dim))           # (H, N, dim)

    q = jnp.einsum("hnd,hde->hne", xh, wq_ref[...],
                   preferred_element_type=jnp.float32)        # (H, N, D)
    k = jnp.einsum("hnd,hde->hne", xh, wk_ref[...],
                   preferred_element_type=jnp.float32)        # (H, N, D)
    v = jnp.einsum("hnd,hde->hne", xh, wv_ref[...],
                   preferred_element_type=jnp.float32)        # (H, N, D)

    # Head-batched q @ k^T (contract D), then one vectorized mask + softmax.
    dots = jnp.einsum("hne,hme->hnm", q, k,
                      preferred_element_type=jnp.float32) * scale   # (H, N, N)
    row = lax.broadcasted_iota(jnp.int32, (N, N), 0)
    col = lax.broadcasted_iota(jnp.int32, (N, N), 1)
    dots = jnp.where((row >= col)[None], dots, _MASK_VALUE)

    m = jnp.max(dots, axis=-1, keepdims=True)
    e = jnp.exp(dots - m)
    inv = pl.reciprocal(jnp.sum(e, axis=-1, keepdims=True), approx=True)  # EUP
    attn = e * inv

    # TODO(synk): train-mode dropout on attn / output (module default
    # dropout=0.0; eval-mode forward is identity, which is implemented).

    out = jnp.einsum("hnm,hme->hne", attn, v,
                     preferred_element_type=jnp.float32)      # (H, N, D)

    # Output projection without the head-merge concatenate: per-head (N, dim)
    # partials, accumulated over heads in f32, then bias.
    y_h = jnp.einsum("hne,hed->hnd", out, wo_ref[...],
                     preferred_element_type=jnp.float32)      # (H, N, dim)
    y = jnp.sum(y_h, axis=0) + bo_ref[...]                    # (N, dim)
    o_ref[0] = y.astype(o_ref.dtype)


def attention_forward(x, w_qkv, w_out, b_out, *, heads: int, dim_head: int):
    """Pallas equivalent of Attention.forward(x) (eval mode)."""
    B, N, dim = x.shape
    inner = heads * dim_head
    assert w_qkv.shape == (dim, 3 * inner)
    assert w_out.shape == (inner, dim)
    assert b_out.shape == (dim,)
    scale = dim_head ** (-0.5)

    # One-time layout plumbing OUTSIDE the kernel: per-head weight slabs so the
    # head-batched dot_generals inside need no slicing/reshape at all.
    w_qkv_r = w_qkv.reshape(dim, 3, heads, dim_head)          # (dim, 3, H, D)
    wq = jnp.transpose(w_qkv_r[:, 0], (1, 0, 2))              # (H, dim, D)
    wk = jnp.transpose(w_qkv_r[:, 1], (1, 0, 2))              # (H, dim, D)
    wv = jnp.transpose(w_qkv_r[:, 2], (1, 0, 2))              # (H, dim, D)
    wo = w_out.reshape(heads, dim_head, dim)                  # (H, D, dim)
    bo = b_out.reshape(1, dim)

    kernel = functools.partial(_attention_kernel, scale=scale)
    const3 = lambda b: (0, 0, 0)   # weights: VMEM-resident across grid steps

    return pl.pallas_call(
        kernel,
        out_shape=jax.ShapeDtypeStruct((B, N, dim), x.dtype),
        grid_spec=pltpu.PrefetchScalarGridSpec(
            num_scalar_prefetch=0,
            grid=(B,),
            in_specs=[
                pl.BlockSpec((1, N, dim), lambda b: (b, 0, 0)),       # x (per batch)
                pl.BlockSpec((heads, dim, dim_head), const3),         # W_q
                pl.BlockSpec((heads, dim, dim_head), const3),         # W_k
                pl.BlockSpec((heads, dim, dim_head), const3),         # W_v
                pl.BlockSpec((heads, dim_head, dim), const3),         # W_out
                pl.BlockSpec((1, dim), lambda b: (0, 0)),             # b_out
            ],
            out_specs=pl.BlockSpec((1, N, dim), lambda b: (b, 0, 0)),
        ),
        compiler_params=pltpu.CompilerParams(
            # Batch axis has no carried state -> shards across the 2 TCs on v7x.
            dimension_semantics=("parallel",),
        ),
    )(x, wq, wk, wv, wo, bo)


if __name__ == "__main__":
    # Small shapes consistent with the module defaults (heads=8, dim_head=64).
    dim, heads, dim_head = 32, 8, 64          # inner_dim = 512
    B, N = 2, 8
    inner = heads * dim_head

    key = jax.random.PRNGKey(0)
    kx, kqkv, kout, kb = jax.random.split(key, 4)

    x = jax.random.normal(kx, (B, N, dim), jnp.float32)
    # nn.Linear-style uniform init (deterministic here; not torch's RNG stream).
    lim_qkv = 1.0 / (dim ** 0.5)
    lim_out = 1.0 / (inner ** 0.5)
    w_qkv = jax.random.uniform(kqkv, (dim, 3 * inner), jnp.float32, -lim_qkv, lim_qkv)
    w_out = jax.random.uniform(kout, (inner, dim), jnp.float32, -lim_out, lim_out)
    b_out = jax.random.uniform(kb, (dim,), jnp.float32, -lim_out, lim_out)

    out = attention_forward(x, w_qkv, w_out, b_out, heads=heads, dim_head=dim_head)
    out = jax.block_until_ready(out)

    # Pure-JAX reference of the eval-mode forward.
    hi = jax.lax.Precision.HIGHEST
    qkv = jnp.einsum("bnd,de->bne", x, w_qkv, precision=hi)
    q, k, v = jnp.split(qkv, 3, axis=-1)
    to_heads = lambda t: t.reshape(B, N, heads, dim_head).transpose(0, 2, 1, 3)
    q, k, v = map(to_heads, (q, k, v))
    dots = jnp.einsum("bhnd,bhmd->bhnm", q, k, precision=hi) * (dim_head ** -0.5)
    causal = jnp.tril(jnp.ones((N, N), dtype=bool))
    dots = jnp.where(causal, dots, -jnp.inf)
    attn = jax.nn.softmax(dots, axis=-1)
    ref = jnp.einsum("bhnm,bhmd->bhnd", attn, v, precision=hi)
    ref = ref.transpose(0, 2, 1, 3).reshape(B, N, inner)
    ref = jnp.einsum("bne,ed->bnd", ref, w_out, precision=hi) + b_out

    assert out.shape == ref.shape and out.dtype == ref.dtype
    max_err = float(jnp.max(jnp.abs(out - ref)))
    assert jnp.allclose(out, ref, atol=2e-2, rtol=2e-2), f"max abs err {max_err}"

    print("KERNEL_OK")
</pallas_src>

<mosaic_0001>
module attributes {stable_mosaic.version = 11 : i64} {
  func.func @_attention_kernel(%arg0: i32, %arg1: memref<1x8x32xf32, #tpu.memory_space<vmem>>, %arg2: memref<8x32x64xf32, #tpu.memory_space<vmem>>, %arg3: memref<8x32x64xf32, #tpu.memory_space<vmem>>, %arg4: memref<8x32x64xf32, #tpu.memory_space<vmem>>, %arg5: memref<8x64x32xf32, #tpu.memory_space<vmem>>, %arg6: memref<1x32xf32, #tpu.memory_space<vmem>>, %arg7: memref<1x8x32xf32, #tpu.memory_space<vmem>>) attributes {dimension_semantics = [#tpu.dimension_semantics<parallel>], iteration_bounds = array<i64: 2>, scalar_prefetch = 0 : i64, scratch_operands = 0 : i64, tpu.core_type = #tpu.core_type<tc>, window_params = [{transform_indices = @transform_0, window_bounds = array<i64: 1, 8, 32>}, {pipeline_mode = #tpu.pipeline_mode<synchronous>, transform_indices = @transform_1, window_bounds = array<i64: 8, 32, 64>}, {pipeline_mode = #tpu.pipeline_mode<synchronous>, transform_indices = @transform_2, window_bounds = array<i64: 8, 32, 64>}, {pipeline_mode = #tpu.pipeline_mode<synchronous>, transform_indices = @transform_3, window_bounds = array<i64: 8, 32, 64>}, {pipeline_mode = #tpu.pipeline_mode<synchronous>, transform_indices = @transform_4, window_bounds = array<i64: 8, 64, 32>}, {pipeline_mode = #tpu.pipeline_mode<synchronous>, transform_indices = @transform_5, window_bounds = array<i64: 1, 32>}, {transform_indices = @transform_6, window_bounds = array<i64: 1, 8, 32>}]} {
    %c0 = arith.constant 0 : index
    %c0_0 = arith.constant 0 : index
    %c0_1 = arith.constant 0 : index
    %0 = vector.load %arg1[%c0, %c0_0, %c0_1] : memref<1x8x32xf32, #tpu.memory_space<vmem>>, vector<1x8x32xf32>
    %1 = vector.shape_cast %0 : vector<1x8x32xf32> to vector<8x32xf32>
    %2 = vector.shape_cast %1 : vector<8x32xf32> to vector<1x8x32xf32>
    %3 = vector.broadcast %2 : vector<1x8x32xf32> to vector<8x8x32xf32>
    %c0_2 = arith.constant 0 : index
    %c0_3 = arith.constant 0 : index
    %c0_4 = arith.constant 0 : index
    %4 = vector.load %arg2[%c0_2, %c0_3, %c0_4] : memref<8x32x64xf32, #tpu.memory_space<vmem>>, vector<8x32x64xf32>
    "tpu.trace_start"() <{level = 10 : i32, message = "hnd,hde->hne"}> : () -> ()
    %cst = arith.constant dense<0.000000e+00> : vector<8x8x64xf32>
    %5 = tpu.matmul %3, %4, %cst {dimension_numbers = #tpu.dot_dimension_numbers<[2], [1], [1], [2], [0, 0, 0, 1, 1, 2], [0], [0]>} : vector<8x8x32xf32>, vector<8x32x64xf32>, vector<8x8x64xf32> -> vector<8x8x64xf32>
    "tpu.trace_stop"() : () -> ()
    %c0_5 = arith.constant 0 : index
    %c0_6 = arith.constant 0 : index
    %c0_7 = arith.constant 0 : index
    %6 = vector.load %arg3[%c0_5, %c0_6, %c0_7] : memref<8x32x64xf32, #tpu.memory_space<vmem>>, vector<8x32x64xf32>
    "tpu.trace_start"() <{level = 10 : i32, message = "hnd,hde->hne"}> : () -> ()
    %cst_8 = arith.constant dense<0.000000e+00> : vector<8x8x64xf32>
    %7 = tpu.matmul %3, %6, %cst_8 {dimension_numbers = #tpu.dot_dimension_numbers<[2], [1], [1], [2], [0, 0, 0, 1, 1, 2], [0], [0]>} : vector<8x8x32xf32>, vector<8x32x64xf32>, vector<8x8x64xf32> -> vector<8x8x64xf32>
    "tpu.trace_stop"() : () -> ()
    %c0_9 = arith.constant 0 : index
    %c0_10 = arith.constant 0 : index
    %c0_11 = arith.constant 0 : index
    %8 = vector.load %arg4[%c0_9, %c0_10, %c0_11] : memref<8x32x64xf32, #tpu.memory_space<vmem>>, vector<8x32x64xf32>
    "tpu.trace_start"() <{level = 10 : i32, message = "hnd,hde->hne"}> : () -> ()
    %cst_12 = arith.constant dense<0.000000e+00> : vector<8x8x64xf32>
    %9 = tpu.matmul %3, %8, %cst_12 {dimension_numbers = #tpu.dot_dimension_numbers<[2], [1], [1], [2], [0, 0, 0, 1, 1, 2], [0], [0]>} : vector<8x8x32xf32>, vector<8x32x64xf32>, vector<8x8x64xf32> -> vector<8x8x64xf32>
    "tpu.trace_stop"() : () -> ()
    "tpu.trace_start"() <{level = 10 : i32, message = "hne,hme->hnm"}> : () -> ()
    %cst_13 = arith.constant dense<0.000000e+00> : vector<8x8x8xf32>
    %10 = tpu.matmul %5, %7, %cst_13 {dimension_numbers = #tpu.dot_dimension_numbers<[2], [2], [1], [1], [0, 0, 0, 1, 1, 1], [0], [0]>} : vector<8x8x64xf32>, vector<8x8x64xf32>, vector<8x8x8xf32> -> vector<8x8x8xf32>
    "tpu.trace_stop"() : () -> ()
    %cst_14 = arith.constant 1.250000e-01 : f32
    %11 = vector.broadcast %cst_14 : f32 to vector<8x8x8xf32>
    %12 = arith.mulf %10, %11 : vector<8x8x8xf32>
    %13 = tpu.iota {dimensions = array<i32: 0>} : vector<8x8xi32>
    %14 = tpu.iota {dimensions = array<i32: 1>} : vector<8x8xi32>
    %15 = arith.cmpi sge, %13, %14 : vector<8x8xi32>
    %16 = vector.shape_cast %15 : vector<8x8xi1> to vector<1x8x8xi1>
    %cst_15 = arith.constant -2.38197633E+38 : f32
    %17 = vector.shape_cast %16 : vector<1x8x8xi1> to vector<1x8x8xi1>
    %18 = vector.broadcast %17 : vector<1x8x8xi1> to vector<8x8x8xi1>
    %19 = vector.broadcast %cst_15 : f32 to vector<8x8x8xf32>
    %20 = arith.select %18, %12, %19 : vector<8x8x8xi1>, vector<8x8x8xf32>
    %cst_16 = arith.constant dense<0xFF800000> : vector<8x8xf32>
    %21 = vector.multi_reduction <maximumf>, %20, %cst_16 [2] : vector<8x8x8xf32> to vector<8x8xf32>
    %22 = vector.shape_cast %21 : vector<8x8xf32> to vector<8x8x1xf32>
    %23 = vector.broadcast %22 : vector<8x8x1xf32> to vector<8x8x8xf32>
    %24 = arith.subf %20, %23 : vector<8x8x8xf32>
    %25 = math.exp %24 : vector<8x8x8xf32>
    %cst_17 = arith.constant dense<0.000000e+00> : vector<8x8xf32>
    %26 = vector.multi_reduction <add>, %25, %cst_17 [2] : vector<8x8x8xf32> to vector<8x8xf32>
    %27 = vector.shape_cast %26 : vector<8x8xf32> to vector<8x8x1xf32>
    %28 = tpu.reciprocal %27 {approx = true} : vector<8x8x1xf32> -> vector<8x8x1xf32>
    %29 = vector.broadcast %28 : vector<8x8x1xf32> to vector<8x8x8xf32>
    %30 = arith.mulf %25, %29 : vector<8x8x8xf32>
    "tpu.trace_start"() <{level = 10 : i32, message = "hnm,hme->hne"}> : () -> ()
    %cst_18 = arith.constant dense<0.000000e+00> : vector<8x8x64xf32>
    %31 = tpu.matmul %30, %9, %cst_18 {dimension_numbers = #tpu.dot_dimension_numbers<[2], [1], [1], [2], [0, 0, 0, 1, 1, 2], [0], [0]>} : vector<8x8x8xf32>, vector<8x8x64xf32>, vector<8x8x64xf32> -> vector<8x8x64xf32>
    "tpu.trace_stop"() : () -> ()
    %c0_19 = arith.constant 0 : index
    %c0_20 = arith.constant 0 : index
    %c0_21 = arith.constant 0 : index
    %32 = vector.load %arg5[%c0_19, %c0_20, %c0_21] : memref<8x64x32xf32, #tpu.memory_space<vmem>>, vector<8x64x32xf32>
    "tpu.trace_start"() <{level = 10 : i32, message = "hne,hed->hnd"}> : () -> ()
    %cst_22 = arith.constant dense<0.000000e+00> : vector<8x8x32xf32>
    %33 = tpu.matmul %31, %32, %cst_22 {dimension_numbers = #tpu.dot_dimension_numbers<[2], [1], [1], [2], [0, 0, 0, 1, 1, 2], [0], [0]>} : vector<8x8x64xf32>, vector<8x64x32xf32>, vector<8x8x32xf32> -> vector<8x8x32xf32>
    "tpu.trace_stop"() : () -> ()
    %cst_23 = arith.constant dense<0.000000e+00> : vector<8x32xf32>
    %34 = vector.multi_reduction <add>, %33, %cst_23 [0] : vector<8x8x32xf32> to vector<8x32xf32>
    %c0_24 = arith.constant 0 : index
    %c0_25 = arith.constant 0 : index
    %35 = vector.load %arg6[%c0_24, %c0_25] : memref<1x32xf32, #tpu.memory_space<vmem>>, vector<1x32xf32>
    %36 = vector.broadcast %35 : vector<1x32xf32> to vector<8x32xf32>
    %37 = arith.addf %34, %36 : vector<8x32xf32>
    %c0_26 = arith.constant 0 : index
    %c0_27 = arith.constant 0 : index
    %c0_28 = arith.constant 0 : index
    %38 = vector.load %arg7[%c0_26, %c0_27, %c0_28] : memref<1x8x32xf32, #tpu.memory_space<vmem>>, vector<1x8x32xf32>
    %39 = vector.shape_cast %38 : vector<1x8x32xf32> to vector<8x32xf32>
    %40 = vector.shape_cast %37 : vector<8x32xf32> to vector<1x8x32xf32>
    tpu.vector_store %arg7[%c0_26, %c0_27, %c0_28], %40 {strides = array<i32>} : memref<1x8x32xf32, #tpu.memory_space<vmem>>, vector<1x8x32xf32>,
    return
  }
  func.func @transform_0(%arg0: i32) -> (i32, i32, i32) {
    %c0_i32 = arith.constant 0 : i32
    %c0_i32_0 = arith.constant 0 : i32
    %c0_i32_1 = arith.constant 0 : i32
    return %arg0, %c0_i32, %c0_i32_0 : i32, i32, i32
  }
  func.func @transform_1(%arg0: i32) -> (i32, i32, i32) {
    %c0_i32 = arith.constant 0 : i32
    %c0_i32_0 = arith.constant 0 : i32
    %c0_i32_1 = arith.constant 0 : i32
    %c0_i32_2 = arith.constant 0 : i32
    return %c0_i32, %c0_i32_0, %c0_i32_1 : i32, i32, i32
  }
  func.func @transform_2(%arg0: i32) -> (i32, i32, i32) {
    %c0_i32 = arith.constant 0 : i32
    %c0_i32_0 = arith.constant 0 : i32
    %c0_i32_1 = arith.constant 0 : i32
    %c0_i32_2 = arith.constant 0 : i32
    return %c0_i32, %c0_i32_0, %c0_i32_1 : i32, i32, i32
  }
  func.func @transform_3(%arg0: i32) -> (i32, i32, i32) {
    %c0_i32 = arith.constant 0 : i32
    %c0_i32_0 = arith.constant 0 : i32
    %c0_i32_1 = arith.constant 0 : i32
    %c0_i32_2 = arith.constant 0 : i32
    return %c0_i32, %c0_i32_0, %c0_i32_1 : i32, i32, i32
  }
  func.func @transform_4(%arg0: i32) -> (i32, i32, i32) {
    %c0_i32 = arith.constant 0 : i32
    %c0_i32_0 = arith.constant 0 : i32
    %c0_i32_1 = arith.constant 0 : i32
    %c0_i32_2 = arith.constant 0 : i32
    return %c0_i32, %c0_i32_0, %c0_i32_1 : i32, i32, i32
  }
  func.func @transform_5(%arg0: i32) -> (i32, i32) {
    %c0_i32 = arith.constant 0 : i32
    %c0_i32_0 = arith.constant 0 : i32
    %c0_i32_1 = arith.constant 0 : i32
    return %c0_i32, %c0_i32_0 : i32, i32
  }
  func.func @transform_6(%arg0: i32) -> (i32, i32, i32) {
    %c0_i32 = arith.constant 0 : i32
    %c0_i32_0 = arith.constant 0 : i32
    %c0_i32_1 = arith.constant 0 : i32
    return %arg0, %c0_i32, %c0_i32_0 : i32, i32, i32
  }
}

</mosaic_0001>

<bundles_post_ra>
// kernel: tpu_custom_call.1
= control target key start
LH: loop header
LB: loop body
LE: loop exit
PB: predicated region body
PF: predicated region fallthrough
CT: control target
= control target key end

     0   :  { %11 = vsyncpa [#allocation3], 0  ;;  %s6165_s0 = inlined_call_operand.hbm [shape: f32[2,8,32], index: 0, kind: input, shape index: {}]   ;;  %s6166_s1 = inlined_call_operand.vmem [shape: f32[8,32,64], index: 1, kind: input, shape index: {}]   ;;  %s6167_s2 = inlined_call_operand.vmem [shape: f32[8,32,64], index: 2, kind: input, shape index: {}]   ;;  %s6168_s3 = inlined_call_operand.vmem [shape: f32[8,32,64], index: 3, kind: input, shape index: {}]   ;;  %s6169_s4 = inlined_call_operand.vmem [shape: f32[8,64,32], index: 4, kind: input, shape index: {}]   ;;  %s6170_s5 = inlined_call_operand.vmem [shape: f32[1,32], index: 5, kind: input, shape index: {}]   ;;  %s6171_s6 = inlined_call_operand.hbm [shape: f32[2,8,32], index: 6, kind: output, shape index: {}]  }
   0x1   :  { %13 = vsyncpa [#allocation3 + $0x1], 0 }
   0x2   :  { %14 = vsyncpa [#allocation4], 0 }
   0x3   :  { %16 = vsyncpa [#allocation4 + $0x1], 0  ;;  %s5111_s21 = smov 0   ;;  %s5113_s22 = smov 0  }
   0x4   :  { %s5115_s23 = smov 0   ;;  %s5117_s24 = smov 0  }
   0x5 LB: > { %s5132_s25 = sadd.s32 4294967295, %s5070_s24   ;;  %s4109_s26 = sadd.s32 4294967294, %s5070_s24   ;;  %s5070_s24 = sphi %s5117_s24, %s6190_s24   ;;  %s5066_s23 = sphi %s5115_s23, %s6189_s23   ;;  %s5062_s22 = sphi %s5113_s22, %s6188_s22   ;;  %s5058_s21 = sphi %s5111_s21, %s6187_s21  }
   0x6   : > { %s5136_s27 = sadd.s32 1, %s5070_s24   ;;  %s29_s28 = sadd.s32 1, %s5066_s23 }
   0x7   : > { %s26_s29 = ssub.s32 %s5070_s24, %s5136_s27  ;;  %p36_p0 = scmp.ne.s32.totalorder %s5066_s23, %s5062_s22 }
   0x8   : > { %p27_p1 = scmp.eq.s32.totalorder %s26_s29, 0  ;;  %p37_p2 = scmp.eq.s32.totalorder %s5070_s24, 0 }
   0x9   : > { %p42_p3 = scmp.ne.s32.totalorder %s5062_s22, %s5058_s21  ;;  %p43_p4 = scmp.eq.s32.totalorder %s5132_s25, 0 }
   0xa   : > { %s5148_s30 = scalar_select %p27_p1, %s5066_s23, %s29_s28  }
   0xb   : > { %p5150_p5 = por %p37_p2, %p36_p0  ;;  %p5154_p6 = por %p43_p4, %p42_p3 }
   0xc   : > { %p171_p7 = scmp.eq.s32.totalorder %s5132_s25, 1  ;;  %p177_p8 = scmp.eq.s32.totalorder %s4109_s26, 1 }
   0xd   : > { %s6175_s8 = scalar_select %p5154_p6, 1, 0 }
   0xe   : > { %p4910_p10 = scmp.lt.s32.totalorder %s5070_s24, 2  ;;  %p5161_p11 = por %p171_p7, %p36_p0 }
   0xf   : > { %p5165_p12 = por %p177_p8, %p42_p3  ;;  %s212_s11 = sand.u32 1, %s5066_s23  }
  0x10   : > { %s6176_s9 = scalar_select %p5161_p11, 1, 0 }
  0x11   : > { %s6177_s10 = scalar_select %p5165_p12, 1, 0 }
  0x12   : > { %s4113_s12 = sshll.u32 %s5070_s24, 7  ;;  %s4112_s13 = sshll.u32 %s212_s11, 3 }
  0x13   : > { %s5174_s16 = scalar_lea.hbm %s6165_s0, %s4113_s12  ;;  %s216_s17 = scalar_lea.vmem [#allocation2], %s4112_s13 }
  0x14   : > { %s223_s18 = sshll.u32 %s216_s17, 4  ;;  %p5178_p13 = pnand %p4910_p10, %p5150_p5  ;;  %s5182_s18 = int_to_ptr.vmem [resolvable:$true] %s223_s18 }
  0x15   : > { %s213_s20 = scalar_lea.sflag [#allocation3], %s212_s11  ;;  %s4978_s26 = scalar_lea.hbm %s5174_s16, 128 }
  0x16   : > { %p4979_p2 = scmp.ne.s32.totalorder %s5174_s16, %s4978_s26  ;;  %p4980_p3 = pneg %p5178_p13 }
  0x17   : > { %s4983_s7 = scalar_lea.hbm %s6165_s0, 256  ;;  %p4984_p5 = scmp.lt.s32.totalorder %s5174_s16, %s6165_s0 }
  0x18   : > { %p4981_p4 = pnand %p4980_p3, %p4979_p2  ;;  %p4985_p8 = scmp.lt.s32.totalorder %s4983_s7, %s4978_s26 }
  0x1a   : > { %p4982_p7 = pneg %p4981_p4  ;;  %p4986_p10 = por %p4985_p8, %p4984_p5 }
  0x1c   : > { %p4987_p9 = pnand %p4986_p10, %p4982_p7 }
  0x1e   : > { %4990 = shalt.err (!%p4987_p9)
}
  0x1f   : > { %s4991_s11 = scalar_lea.vmem %s5182_s18, 128  ;;  %s5072_s14 = smov [#allocation2]  }
  0x20   : > { %p4992_p0 = scmp.ne.s32.totalorder %s5182_s18, %s4991_s11  ;;  %s4996_s15 = sshll.u32 %s5072_s14, 4  ;;  %s4997_s15 = int_to_ptr.vmem [resolvable:$false] %s4996_s15 }
  0x21   : > { %s4998_s17 = scalar_lea.vmem %s4997_s15, 256  ;;  %p4999_p4 = scmp.lt.s32.totalorder %s5182_s18, %s4997_s15 }
  0x22   : > { %p4994_p1 = pnand %p4992_p0, %p4980_p3  ;;  %p5000_p12 = scmp.lt.s32.totalorder %s4998_s17, %s4991_s11 }
  0x24   : > { %p4995_p2 = pneg %p4994_p1  ;;  %p5001_p11 = por %p5000_p12, %p4999_p4 }
  0x26   : > { %p5002_p6 = pnand %p5001_p11, %p4995_p2 }
  0x28   : > { %5005 = shalt.err (!%p5002_p6)
}
  0x29   : > { %4905 = dma.hbm_to_vmem [thread:$0]  (!%p5178_p13), %s5174_s16, 128, %s5182_s18, %s213_s20  }
  0x2a   : > { %p6179_p9 = scmp.lt.s32.totalorder %s5070_s24, 3  ;;  %p6180_p7 = scmp.ge.s32.totalorder %s5070_s24, 1 }
  0x2c   : > { %p229_p0 = pnand %p6180_p7, %p6179_p9 }
  0x2d   : > { %s5209_s26 = sand.u32 (!%p229_p0), 1, %s5062_s22   ;;  %p6181_p6 = scmp.ne.s32.totalorder (!%p229_p0), %s6175_s8, 0 }
  0x2e   : > { %232 = sbr.rel (%p229_p0) target bundleno = 1266 (0x4f2), region = 44  ;;  %s4115_s28 = sshll.u32 (!%p229_p0), %s5209_s26, 3 }
  0x2f   : > { %s235_s29 = scalar_lea.sflag (!%p229_p0), [#allocation3], %s5209_s26  ;;  %s238_s19 = scalar_lea.vmem (!%p229_p0), [#allocation2], %s4115_s28 }
  0x33   : > { %5049 = dma.done.wait (%p6181_p6), %s235_s29, 128  }
  0x34   : > { %5051 = vsyncadd (%p6181_p6), %s235_s29, 4294967168  ;;  %v5073_v0 = vmov 0.0   ;;  %vm5074_vm0 = vmmov 0   ;;  %v271_v1 = vld [vmem:[%s6166_s1 + $0x18] sm:$0xff]  ;;  %v270_v3 = vld [vmem:[%s6166_s1 + $0x10] sm:$0xff]  ;;  %vm300_vm1 = vcmask 261120  }
  0x35   : > { %4402 = vmatprep.subr.mxu0 %v5073_v0  ;;  %4413 = vmatprep.subr.mxu1 %v5073_v0  ;;  %v275_v2 = vld [vmem:[%s6166_s1 + $0x38] sm:$0xff]  ;;  %v274_v4 = vld [vmem:[%s6166_s1 + $0x30] sm:$0xff]  ;;  %v269_v5 = vld [vmem:[%s6166_s1 + $0x8] sm:$0xff]  ;;  %vm2048_vm2 = vcmask 523264   ;;  %vm2680_vm4 = vcmask 64512   ;;  %s4175_s17 = sshll.u32 %s5132_s25, 7 }
  0x36   : > { %4410 = vmatprep.mubr.msk.f32.mxu0 %vm5074_vm0, %v5073_v0  ;;  %4421 = vmatprep.mubr.msk.f32.mxu1 %vm5074_vm0, %v5073_v0  ;;  %v273_v6 = vld [vmem:[%s6166_s1 + $0x28] sm:$0xff]  ;;  %v268_v7 = vld [vmem:[%s6166_s1] sm:$0xff]  ;;  %v279_v10 = vld [vmem:[%s6166_s1 + $0x58] sm:$0xff]  ;;  %s266_s29 = scalar_lea.vmem [#allocation5], %s4115_s28  ;;  %s4037_s7 = scalar_lea.hbm %s6171_s6, %s4175_s17 }
  0x37   : > { %4403 = vmatpush3.msra.mxu0 %v271_v1  ;;  %4414 = vmatpush3.msra.mxu1 %v275_v2  ;;  %v272_v8 = vld [vmem:[%s6166_s1 + $0x20] sm:$0xff]  ;;  %v283_v11 = vld [vmem:[%s6166_s1 + $0x78] sm:$0xff]  ;;  %v278_v12 = vld [vmem:[%s6166_s1 + $0x50] sm:$0xff]  ;;  %s4039_s16 = sshll.u32 %s266_s29, 4  ;;  %s4026_s8 = scalar_lea.sflag [#allocation4], %s5209_s26  ;;  %s4040_s16 = int_to_ptr.vmem [resolvable:$true] %s4039_s16 }
  0x38   : > { %4404 = vmatprep.subr.mxu0 %v5073_v0  ;;  %4415 = vmatprep.subr.mxu1 %v5073_v0  ;;  %v5253_v9 = vld [vmem:[%s238_s19] sm:$0xff]  ;;  %v282_v13 = vld [vmem:[%s6166_s1 + $0x70] sm:$0xff]  ;;  %v287_v18 = vld [vmem:[%s6166_s1 + $0x98] sm:$0xff]  ;;  %s5006_s12 = scalar_lea.vmem %s4040_s16, 128  ;;  %p6184_p12 = scmp.ne.s32.totalorder %s6176_s9, 0 }
  0x39   : > { %4405 = vmatpush3.msra.mxu0 %v270_v3  ;;  %4416 = vmatpush3.msra.mxu1 %v274_v4  ;;  %v277_v14 = vld [vmem:[%s6166_s1 + $0x48] sm:$0xff]  ;;  %v276_v16 = vld [vmem:[%s6166_s1 + $0x40] sm:$0xff]  ;;  %v291_v19 = vld [vmem:[%s6166_s1 + $0xb8] sm:$0xff]  ;;  %p5007_p11 = scmp.ne.s32.totalorder %s4040_s16, %s5006_s12  ;;  %s5075_s25 = smov [#allocation5]  }
  0x3a   : > { %4406 = vmatprep.subr.mxu0 %v5073_v0  ;;  %4417 = vmatprep.subr.mxu1 %v5073_v0  ;;  %v281_v15 = vld [vmem:[%s6166_s1 + $0x68] sm:$0xff]  ;;  %v280_v17 = vld [vmem:[%s6166_s1 + $0x60] sm:$0xff]  ;;  %v286_v20 = vld [vmem:[%s6166_s1 + $0x90] sm:$0xff]  ;;  %s5010_s13 = sshll.u32 %s5075_s25, 4  ;;  %s5011_s13 = int_to_ptr.vmem [resolvable:$false] %s5010_s13 }
  0x3b   : > { %4407 = vmatpush3.msra.mxu0 %v269_v5  ;;  %4418 = vmatpush3.msra.mxu1 %v273_v6  ;;  %v290_v21 = vld [vmem:[%s6166_s1 + $0xb0] sm:$0xff]  ;;  %v285_v22 = vld [vmem:[%s6166_s1 + $0x88] sm:$0xff]  ;;  %v284_v24 = vld [vmem:[%s6166_s1 + $0x80] sm:$0xff]  ;;  %p5008_p13 = pnand %p5007_p11, %p6184_p12  ;;  %s5012_s28 = scalar_lea.vmem %s5011_s13, 256 }
  0x3c   : > { %4408 = vmatprep.subr.mxu0 %v5073_v0  ;;  %4419 = vmatprep.subr.mxu1 %v5073_v0  ;;  %v289_v23 = vld [vmem:[%s6166_s1 + $0xa8] sm:$0xff]  ;;  %v288_v25 = vld [vmem:[%s6166_s1 + $0xa0] sm:$0xff]  ;;  %v295_v26 = vld [vmem:[%s6166_s1 + $0xd8] sm:$0xff]  ;;  %p5013_p3 = scmp.lt.s32.totalorder %s4040_s16, %s5011_s13  ;;  %p5014_p5 = scmp.lt.s32.totalorder %s5012_s28, %s5006_s12 }
  0x3d   : > { %4409 = vmatpush3.msra.mxu0 %v268_v7  ;;  %4420 = vmatpush3.msra.mxu1 %v272_v8  ;;  %v299_v27 = vld [vmem:[%s6166_s1 + $0xf8] sm:$0xff]  ;;  %v294_v28 = vld [vmem:[%s6166_s1 + $0xd0] sm:$0xff]  ;;  %v293_v30 = vld [vmem:[%s6166_s1 + $0xc8] sm:$0xff]  ;;  %p5009_p1 = pneg %p5008_p13 }
  0x3e   : > { %4411 = vmatmul.mubr.msk.f32.vlgmr.msra.gmra.mxu0 %vm300_vm1, %v5253_v9  ;;  %4424 = vmatprep.subr.mxu0 %v5073_v0  ;;  %v298_v29 = vld [vmem:[%s6166_s1 + $0xf0] sm:$0xff]  ;;  %v297_v31 = vld [vmem:[%s6166_s1 + $0xe8] sm:$0xff]  ;;  %v292_v32 = vld [vmem:[%s6166_s1 + $0xc0] sm:$0xff]  ;;  %p5015_p8 = por %p5014_p5, %p5013_p3 }
  0x3f   : > { %4435 = vmatprep.subr.mxu1 %v5073_v0  ;;  %4422 = vmatmul.mubr.msk.f32.vlgmr.msra.gmra.mxu1 %vm300_vm1, %v5253_v9  ;;  %v296_v33 = vld [vmem:[%s6166_s1 + $0xe0] sm:$0xff]  ;;  %v867_v34 = vld [vmem:[%s6167_s2 + $0x18] sm:$0xff]  ;;  %v866_v36 = vld [vmem:[%s6167_s2 + $0x10] sm:$0xff] }
  0x40   : > { %4425 = vmatpush3.msra.mxu0 %v279_v10  ;;  %4436 = vmatpush3.msra.mxu1 %v283_v11  ;;  %v871_v35 = vld [vmem:[%s6167_s2 + $0x38] sm:$0xff]  ;;  %v870_v37 = vld [vmem:[%s6167_s2 + $0x30] sm:$0xff]  ;;  %v865_v38 = vld [vmem:[%s6167_s2 + $0x8] sm:$0xff]  ;;  %p5016_p10 = pnand %p5015_p8, %p5009_p1 }
  0x41   : > { %4426 = vmatprep.subr.mxu0 %v5073_v0  ;;  %4437 = vmatprep.subr.mxu1 %v5073_v0  ;;  %v869_v39 = vld [vmem:[%s6167_s2 + $0x28] sm:$0xff]  ;;  %v864_v40 = vld [vmem:[%s6167_s2] sm:$0xff]  ;;  %v875_v42 = vld [vmem:[%s6167_s2 + $0x58] sm:$0xff] }
  0x42   : > { %4427 = vmatpush3.msra.mxu0 %v278_v12  ;;  %4438 = vmatpush3.msra.mxu1 %v282_v13  ;;  %v868_v41 = vld [vmem:[%s6167_s2 + $0x20] sm:$0xff]  ;;  %v879_v43 = vld [vmem:[%s6167_s2 + $0x78] sm:$0xff]  ;;  %v874_v44 = vld [vmem:[%s6167_s2 + $0x50] sm:$0xff] }
  0x43   : > { %4428 = vmatprep.subr.mxu0 %v5073_v0  ;;  %4439 = vmatprep.subr.mxu1 %v5073_v0  ;;  %v878_v45 = vld [vmem:[%s6167_s2 + $0x70] sm:$0xff]  ;;  %v873_v46 = vld [vmem:[%s6167_s2 + $0x48] sm:$0xff]  ;;  %v872_v48 = vld [vmem:[%s6167_s2 + $0x40] sm:$0xff] }
  0x44   : > { %4429 = vmatpush3.msra.mxu0 %v277_v14  ;;  %4440 = vmatpush3.msra.mxu1 %v281_v15  ;;  %v877_v47 = vld [vmem:[%s6167_s2 + $0x68] sm:$0xff]  ;;  %v876_v49 = vld [vmem:[%s6167_s2 + $0x60] sm:$0xff]  ;;  %v883_v50 = vld [vmem:[%s6167_s2 + $0x98] sm:$0xff] }
  0x45   : > { %4430 = vmatprep.subr.mxu0 %v5073_v0  ;;  %4441 = vmatprep.subr.mxu1 %v5073_v0  ;;  %v887_v51 = vld [vmem:[%s6167_s2 + $0xb8] sm:$0xff]  ;;  %v882_v52 = vld [vmem:[%s6167_s2 + $0x90] sm:$0xff]  ;;  %v881_v54 = vld [vmem:[%s6167_s2 + $0x88] sm:$0xff] }
  0x46   : > { %4431 = vmatpush3.msra.mxu0 %v276_v16  ;;  %4432 = vmatprep.mubr.msk.f32.mxu0 %vm5074_vm0, %v5073_v0  ;;  %v886_v53 = vld [vmem:[%s6167_s2 + $0xb0] sm:$0xff]  ;;  %v885_v55 = vld [vmem:[%s6167_s2 + $0xa8] sm:$0xff]  ;;  %v880_v56 = vld [vmem:[%s6167_s2 + $0x80] sm:$0xff] }
  0x47   : > { %4442 = vmatpush3.msra.mxu1 %v280_v17  ;;  %4433 = vmatmul.mubr.msk.f32.vlgmr.msra.gmra.mxu0 %vm300_vm1, %v5253_v9  ;;  %v884_v57 = vld [vmem:[%s6167_s2 + $0xa0] sm:$0xff]  ;;  %v891_v58 = vld [vmem:[%s6167_s2 + $0xd8] sm:$0xff]  ;;  %v890_v60 = vld [vmem:[%s6167_s2 + $0xd0] sm:$0xff] }
  0x48   : > { %4443 = vmatprep.mubr.msk.f32.mxu1 %vm5074_vm0, %v5073_v0  ;;  %4446 = vmatprep.subr.mxu0 %v5073_v0  ;;  %v895_v59 = vld [vmem:[%s6167_s2 + $0xf8] sm:$0xff]  ;;  %v894_v61 = vld [vmem:[%s6167_s2 + $0xf0] sm:$0xff]  ;;  %v889_v62 = vld [vmem:[%s6167_s2 + $0xc8] sm:$0xff] }
  0x49   : > { %4457 = vmatprep.subr.mxu1 %v5073_v0  ;;  %4444 = vmatmul.mubr.msk.f32.vlgmr.msra.gmra.mxu1 %vm300_vm1, %v5253_v9  ;;  %v893_v63 = vld [vmem:[%s6167_s2 + $0xe8] sm:$0xff]  ;;  %v888_v1 = vld [vmem:[%s6167_s2 + $0xc0] sm:$0xff]  ;;  %v1459_v3 = vld [vmem:[%s6168_s3 + $0x18] sm:$0xff] }
  0x4a   : > { %4447 = vmatpush3.msra.mxu0 %v287_v18  ;;  %4458 = vmatpush3.msra.mxu1 %v291_v19  ;;  %v892_v2 = vld [vmem:[%s6167_s2 + $0xe0] sm:$0xff]  ;;  %v1463_v4 = vld [vmem:[%s6168_s3 + $0x38] sm:$0xff]  ;;  %v1458_v5 = vld [vmem:[%s6168_s3 + $0x10] sm:$0xff] }
  0x4b   : > { %4448 = vmatprep.subr.mxu0 %v5073_v0  ;;  %4459 = vmatprep.subr.mxu1 %v5073_v0  ;;  %v1462_v6 = vld [vmem:[%s6168_s3 + $0x30] sm:$0xff]  ;;  %v1457_v7 = vld [vmem:[%s6168_s3 + $0x8] sm:$0xff]  ;;  %v1456_v10 = vld [vmem:[%s6168_s3] sm:$0xff] }
  0x4c   : > { %4449 = vmatpush3.msra.mxu0 %v286_v20  ;;  %4460 = vmatpush3.msra.mxu1 %v290_v21  ;;  %v1461_v8 = vld [vmem:[%s6168_s3 + $0x28] sm:$0xff]  ;;  %v1460_v11 = vld [vmem:[%s6168_s3 + $0x20] sm:$0xff]  ;;  %v1467_v12 = vld [vmem:[%s6168_s3 + $0x58] sm:$0xff] }
  0x4d   : > { %4450 = vmatprep.subr.mxu0 %v5073_v0  ;;  %4461 = vmatprep.subr.mxu1 %v5073_v0  ;;  %v1471_v13 = vld [vmem:[%s6168_s3 + $0x78] sm:$0xff]  ;;  %v1466_v14 = vld [vmem:[%s6168_s3 + $0x50] sm:$0xff]  ;;  %v1465_v16 = vld [vmem:[%s6168_s3 + $0x48] sm:$0xff] }
  0x4e   : > { %4451 = vmatpush3.msra.mxu0 %v285_v22  ;;  %4462 = vmatpush3.msra.mxu1 %v289_v23  ;;  %v1470_v15 = vld [vmem:[%s6168_s3 + $0x70] sm:$0xff]  ;;  %v1469_v17 = vld [vmem:[%s6168_s3 + $0x68] sm:$0xff]  ;;  %v1464_v18 = vld [vmem:[%s6168_s3 + $0x40] sm:$0xff] }
  0x4f   : > { %4452 = vmatprep.subr.mxu0 %v5073_v0  ;;  %4463 = vmatprep.subr.mxu1 %v5073_v0  ;;  %v1468_v19 = vld [vmem:[%s6168_s3 + $0x60] sm:$0xff]  ;;  %v1475_v20 = vld [vmem:[%s6168_s3 + $0x98] sm:$0xff]  ;;  %v1474_v22 = vld [vmem:[%s6168_s3 + $0x90] sm:$0xff] }
  0x50   : > { %4453 = vmatpush3.msra.mxu0 %v284_v24  ;;  %4454 = vmatprep.mubr.msk.f32.mxu0 %vm5074_vm0, %v5073_v0  ;;  %v1479_v21 = vld [vmem:[%s6168_s3 + $0xb8] sm:$0xff]  ;;  %v1478_v23 = vld [vmem:[%s6168_s3 + $0xb0] sm:$0xff]  ;;  %v1473_v24 = vld [vmem:[%s6168_s3 + $0x88] sm:$0xff] }
  0x51   : > { %4464 = vmatpush3.msra.mxu1 %v288_v25  ;;  %4455 = vmatmul.mubr.msk.f32.vlgmr.msra.gmra.mxu0 %vm300_vm1, %v5253_v9  ;;  %v1477_v25 = vld [vmem:[%s6168_s3 + $0xa8] sm:$0xff] }
  0x52   : > { %4465 = vmatprep.mubr.msk.f32.mxu1 %vm5074_vm0, %v5073_v0  ;;  %4468 = vmatprep.subr.mxu0 %v5073_v0 }
  0x53   : > { %4479 = vmatprep.subr.mxu1 %v5073_v0  ;;  %4466 = vmatmul.mubr.msk.f32.vlgmr.msra.gmra.mxu1 %vm300_vm1, %v5253_v9 }
  0x54   : > { %4469 = vmatpush3.msra.mxu0 %v295_v26  ;;  %4480 = vmatpush3.msra.mxu1 %v299_v27  ;;  %v1472_v26 = vld [vmem:[%s6168_s3 + $0x80] sm:$0xff] }
  0x55   : > { %4470 = vmatprep.subr.mxu0 %v5073_v0  ;;  %4481 = vmatprep.subr.mxu1 %v5073_v0  ;;  %v1476_v27 = vld [vmem:[%s6168_s3 + $0xa0] sm:$0xff] }
  0x56   : > { %4471 = vmatpush3.msra.mxu0 %v294_v28  ;;  %4482 = vmatpush3.msra.mxu1 %v298_v29  ;;  %v1483_v28 = vld [vmem:[%s6168_s3 + $0xd8] sm:$0xff] }
  0x57   : > { %4472 = vmatprep.subr.mxu0 %v5073_v0  ;;  %4483 = vmatprep.subr.mxu1 %v5073_v0  ;;  %v1487_v29 = vld [vmem:[%s6168_s3 + $0xf8] sm:$0xff] }
  0x58   : > { %4473 = vmatpush3.msra.mxu0 %v293_v30  ;;  %4484 = vmatpush3.msra.mxu1 %v297_v31  ;;  %v1482_v30 = vld [vmem:[%s6168_s3 + $0xd0] sm:$0xff] }
  0x59   : > { %4474 = vmatprep.subr.mxu0 %v5073_v0  ;;  %4485 = vmatprep.subr.mxu1 %v5073_v0  ;;  %v1486_v31 = vld [vmem:[%s6168_s3 + $0xf0] sm:$0xff] }
  0x5a   : > { %4475 = vmatpush3.msra.mxu0 %v292_v32  ;;  %4476 = vmatprep.mubr.msk.f32.mxu0 %vm5074_vm0, %v5073_v0  ;;  %v1481_v32 = vld [vmem:[%s6168_s3 + $0xc8] sm:$0xff] }
  0x5b   : > { %4486 = vmatpush3.msra.mxu1 %v296_v33  ;;  %4477 = vmatmul.mubr.msk.f32.vlgmr.msra.gmra.mxu0 %vm300_vm1, %v5253_v9  ;;  %v1485_v33 = vld [vmem:[%s6168_s3 + $0xe8] sm:$0xff] }
  0x5c   : > { %4487 = vmatprep.mubr.msk.f32.mxu1 %vm5074_vm0, %v5073_v0  ;;  %4490 = vmatprep.subr.mxu0 %v5073_v0 }
  0x5d   : > { %4501 = vmatprep.subr.mxu1 %v5073_v0  ;;  %4488 = vmatmul.mubr.msk.f32.vlgmr.msra.gmra.mxu1 %vm300_vm1, %v5253_v9 }
  0x5e   : > { %4491 = vmatpush3.msra.mxu0 %v867_v34  ;;  %4502 = vmatpush3.msra.mxu1 %v871_v35  ;;  %v1480_v34 = vld [vmem:[%s6168_s3 + $0xc0] sm:$0xff] }
  0x5f   : > { %4492 = vmatprep.subr.mxu0 %v5073_v0  ;;  %4503 = vmatprep.subr.mxu1 %v5073_v0  ;;  %v1484_v35 = vld [vmem:[%s6168_s3 + $0xe0] sm:$0xff] }
  0x60   : > { %4493 = vmatpush3.msra.mxu0 %v866_v36  ;;  %4504 = vmatpush3.msra.mxu1 %v870_v37 }
  0x61   : > { %4494 = vmatprep.subr.mxu0 %v5073_v0  ;;  %4505 = vmatprep.subr.mxu1 %v5073_v0 }
  0x62   : > { %4495 = vmatpush3.msra.mxu0 %v865_v38  ;;  %4506 = vmatpush3.msra.mxu1 %v869_v39 }
  0x63   : > { %4496 = vmatprep.subr.mxu0 %v5073_v0  ;;  %4507 = vmatprep.subr.mxu1 %v5073_v0 }
  0x64   : > { %4497 = vmatpush3.msra.mxu0 %v864_v40  ;;  %4498 = vmatprep.mubr.msk.f32.mxu0 %vm5074_vm0, %v5073_v0 }
  0x65   : > { %4508 = vmatpush3.msra.mxu1 %v868_v41  ;;  %4509 = vmatprep.mubr.msk.f32.mxu1 %vm5074_vm0, %v5073_v0 }
  0x66   : > { %4499 = vmatmul.mubr.msk.f32.vlgmr.msra.gmra.mxu0 %vm300_vm1, %v5253_v9  ;;  %4510 = vmatmul.mubr.msk.f32.vlgmr.msra.gmra.mxu1 %vm300_vm1, %v5253_v9 }
  0x67   : > { %4512 = vmatprep.subr.mxu0 %v5073_v0  ;;  %4523 = vmatprep.subr.mxu1 %v5073_v0 }
  0x68   : > { %4513 = vmatpush3.msra.mxu0 %v875_v42  ;;  %4524 = vmatpush3.msra.mxu1 %v879_v43 }
  0x69   : > { %4514 = vmatprep.subr.mxu0 %v5073_v0  ;;  %4525 = vmatprep.subr.mxu1 %v5073_v0 }
  0x6a   : > { %4515 = vmatpush3.msra.mxu0 %v874_v44  ;;  %4526 = vmatpush3.msra.mxu1 %v878_v45 }
  0x6b   : > { %4516 = vmatprep.subr.mxu0 %v5073_v0  ;;  %4527 = vmatprep.subr.mxu1 %v5073_v0 }
  0x6c   : > { %4517 = vmatpush3.msra.mxu0 %v873_v46  ;;  %4528 = vmatpush3.msra.mxu1 %v877_v47 }
  0x6d   : > { %4518 = vmatprep.subr.mxu0 %v5073_v0  ;;  %4529 = vmatprep.subr.mxu1 %v5073_v0 }
  0x6e   : > { %4519 = vmatpush3.msra.mxu0 %v872_v48  ;;  %4520 = vmatprep.mubr.msk.f32.mxu0 %vm5074_vm0, %v5073_v0 }
  0x6f   : > { %4530 = vmatpush3.msra.mxu1 %v876_v49  ;;  %4531 = vmatprep.mubr.msk.f32.mxu1 %vm5074_vm0, %v5073_v0 }
  0x70   : > { %4521 = vmatmul.mubr.msk.f32.vlgmr.msra.gmra.mxu0 %vm300_vm1, %v5253_v9  ;;  %4532 = vmatmul.mubr.msk.f32.vlgmr.msra.gmra.mxu1 %vm300_vm1, %v5253_v9 }
  0x71   : > { %4534 = vmatprep.subr.mxu0 %v5073_v0  ;;  %4545 = vmatprep.subr.mxu1 %v5073_v0 }
  0x72   : > { %4535 = vmatpush3.msra.mxu0 %v883_v50  ;;  %4546 = vmatpush3.msra.mxu1 %v887_v51 }
  0x73   : > { %4536 = vmatprep.subr.mxu0 %v5073_v0  ;;  %4547 = vmatprep.subr.mxu1 %v5073_v0 }
  0x74   : > { %4537 = vmatpush3.msra.mxu0 %v882_v52  ;;  %4548 = vmatpush3.msra.mxu1 %v886_v53 }
  0x75   : > { %4538 = vmatprep.subr.mxu0 %v5073_v0  ;;  %4549 = vmatprep.subr.mxu1 %v5073_v0 }
  0x76   : > { %4539 = vmatpush3.msra.mxu0 %v881_v54  ;;  %4550 = vmatpush3.msra.mxu1 %v885_v55 }
  0x77   : > { %4540 = vmatprep.subr.mxu0 %v5073_v0  ;;  %4551 = vmatprep.subr.mxu1 %v5073_v0 }
  0x78   : > { %4541 = vmatpush3.msra.mxu0 %v880_v56  ;;  %4542 = vmatprep.mubr.msk.f32.mxu0 %vm5074_vm0, %v5073_v0 }
  0x79   : > { %4552 = vmatpush3.msra.mxu1 %v884_v57  ;;  %4553 = vmatprep.mubr.msk.f32.mxu1 %vm5074_vm0, %v5073_v0 }
  0x7a   : > { %4543 = vmatmul.mubr.msk.f32.vlgmr.msra.gmra.mxu0 %vm300_vm1, %v5253_v9  ;;  %4554 = vmatmul.mubr.msk.f32.vlgmr.msra.gmra.mxu1 %vm300_vm1, %v5253_v9 }
  0x7b   : > { %4556 = vmatprep.subr.mxu0 %v5073_v0  ;;  %4567 = vmatprep.subr.mxu1 %v5073_v0 }
  0x7c   : > { %4557 = vmatpush3.msra.mxu0 %v891_v58  ;;  %4568 = vmatpush3.msra.mxu1 %v895_v59 }
  0x7d   : > { %4558 = vmatprep.subr.mxu0 %v5073_v0  ;;  %4569 = vmatprep.subr.mxu1 %v5073_v0 }
  0x7e   : > { %4559 = vmatpush3.msra.mxu0 %v890_v60  ;;  %4570 = vmatpush3.msra.mxu1 %v894_v61 }
  0x7f   : > { %4560 = vmatprep.subr.mxu0 %v5073_v0  ;;  %4571 = vmatprep.subr.mxu1 %v5073_v0 }
  0x80   : > { %4561 = vmatpush3.msra.mxu0 %v889_v62  ;;  %4572 = vmatpush3.msra.mxu1 %v893_v63 }
  0x81   : > { %4562 = vmatprep.subr.mxu0 %v5073_v0  ;;  %4573 = vmatprep.subr.mxu1 %v5073_v0 }
  0x82   : > { %4563 = vmatpush3.msra.mxu0 %v888_v1  ;;  %4564 = vmatprep.mubr.msk.f32.mxu0 %vm5074_vm0, %v5073_v0 }
  0x83   : > { %4574 = vmatpush3.msra.mxu1 %v892_v2  ;;  %4575 = vmatprep.mubr.msk.f32.mxu1 %vm5074_vm0, %v5073_v0 }
  0x84   : > { %4565 = vmatmul.mubr.msk.f32.vlgmr.msra.gmra.mxu0 %vm300_vm1, %v5253_v9  ;;  %4576 = vmatmul.mubr.msk.f32.vlgmr.msra.gmra.mxu1 %vm300_vm1, %v5253_v9 }
  0x85   : > { %4578 = vmatprep.subr.mxu0 %v5073_v0  ;;  %4589 = vmatprep.subr.mxu1 %v5073_v0 }
  0x86   : > { %4579 = vmatpush3.msra.mxu0 %v1459_v3  ;;  %4590 = vmatpush3.msra.mxu1 %v1463_v4 }
  0x87   : > { %4580 = vmatprep.subr.mxu0 %v5073_v0  ;;  %4591 = vmatprep.subr.mxu1 %v5073_v0 }
  0x88   : > { %4581 = vmatpush3.msra.mxu0 %v1458_v5  ;;  %4592 = vmatpush3.msra.mxu1 %v1462_v6 }
  0x89   : > { %4582 = vmatprep.subr.mxu0 %v5073_v0  ;;  %4593 = vmatprep.subr.mxu1 %v5073_v0 }
  0x8a   : > { %4583 = vmatpush3.msra.mxu0 %v1457_v7  ;;  %4594 = vmatpush3.msra.mxu1 %v1461_v8 }
  0x8b   : > { %4584 = vmatprep.subr.mxu0 %v5073_v0  ;;  %4586 = vmatprep.mubr.msk.f32.mxu0 %vm5074_vm0, %v5073_v0 }
  0x8c   : > { %4585 = vmatpush3.msra.mxu0 %v1456_v10  ;;  %4595 = vmatprep.subr.mxu1 %v5073_v0 }
  0x8d   : > { %4587 = vmatmul.mubr.msk.f32.vlgmr.msra.gmra.mxu0 %vm300_vm1, %v5253_v9  ;;  %4596 = vmatpush3.msra.mxu1 %v1460_v11 }
  0x8e   : > { %4600 = vmatprep.subr.mxu0 %v5073_v0  ;;  %4597 = vmatprep.mubr.msk.f32.mxu1 %vm5074_vm0, %v5073_v0 }
  0x8f   : > { %4601 = vmatpush3.msra.mxu0 %v1467_v12  ;;  %4611 = vmatprep.subr.mxu1 %v5073_v0 }
  0x90   : > { %4598 = vmatmul.mubr.msk.f32.vlgmr.msra.gmra.mxu1 %vm300_vm1, %v5253_v9  ;;  %4602 = vmatprep.subr.mxu0 %v5073_v0 }
  0x91   : > { %4612 = vmatpush3.msra.mxu1 %v1471_v13  ;;  %4603 = vmatpush3.msra.mxu0 %v1466_v14 }
  0x92   : > { %4613 = vmatprep.subr.mxu1 %v5073_v0  ;;  %4604 = vmatprep.subr.mxu0 %v5073_v0 }
  0x93   : > { %4614 = vmatpush3.msra.mxu1 %v1470_v15  ;;  %4605 = vmatpush3.msra.mxu0 %v1465_v16 }
  0x94   : > { %4615 = vmatprep.subr.mxu1 %v5073_v0  ;;  %4606 = vmatprep.subr.mxu0 %v5073_v0 }
  0x95   : > { %4616 = vmatpush3.msra.mxu1 %v1469_v17  ;;  %4607 = vmatpush3.msra.mxu0 %v1464_v18 }
  0x96   : > { %4608 = vmatprep.mubr.msk.f32.mxu0 %vm5074_vm0, %v5073_v0  ;;  %4617 = vmatprep.subr.mxu1 %v5073_v0 }
  0x97   : > { %4609 = vmatmul.mubr.msk.f32.vlgmr.msra.gmra.mxu0 %vm300_vm1, %v5253_v9  ;;  %4618 = vmatpush3.msra.mxu1 %v1468_v19 }
  0x98   : > { %4622 = vmatprep.subr.mxu0 %v5073_v0  ;;  %4619 = vmatprep.mubr.msk.f32.mxu1 %vm5074_vm0, %v5073_v0 }
  0x99   : > { %4623 = vmatpush3.msra.mxu0 %v1475_v20  ;;  %4633 = vmatprep.subr.mxu1 %v5073_v0 }
  0x9a   : > { %4620 = vmatmul.mubr.msk.f32.vlgmr.msra.gmra.mxu1 %vm300_vm1, %v5253_v9  ;;  %4624 = vmatprep.subr.mxu0 %v5073_v0 }
  0x9b   : > { %4634 = vmatpush3.msra.mxu1 %v1479_v21  ;;  %4625 = vmatpush3.msra.mxu0 %v1474_v22  ;;  %v2665_v21 = vlaneseq }
  0x9c   : > { %4635 = vmatprep.subr.mxu1 %v5073_v0  ;;  %4626 = vmatprep.subr.mxu0 %v5073_v0 }
  0x9d   : > { %4636 = vmatpush3.msra.mxu1 %v1478_v23  ;;  %4627 = vmatpush3.msra.mxu0 %v1473_v24  ;;  %v2666_v22 = vshrl.u32 %v2665_v21, 7  ;;  %v2668_v23 = vand.u32 127, %v2665_v21 }
  0x9e   : > { %4637 = vmatprep.subr.mxu1 %v5073_v0  ;;  %4628 = vmatprep.subr.mxu0 %v5073_v0 }
  0x9f   : > { %4638 = vmatpush3.msra.mxu1 %v1477_v25  ;;  %4629 = vmatpush3.msra.mxu0 %v1472_v26  ;;  %vm5761_vm3 = vcmp.ge.s32.totalorder %v2666_v22, %v2668_v23 }
  0xa0   : > { %4630 = vmatprep.mubr.msk.f32.mxu0 %vm5074_vm0, %v5073_v0  ;;  %4639 = vmatprep.subr.mxu1 %v5073_v0 }
  0xa1   : > { %4631 = vmatmul.mubr.msk.f32.vlgmr.msra.gmra.mxu0 %vm300_vm1, %v5253_v9  ;;  %4640 = vmatpush3.msra.mxu1 %v1476_v27 }
  0xa2   : > { %4644 = vmatprep.subr.mxu0 %v5073_v0  ;;  %4641 = vmatprep.mubr.msk.f32.mxu1 %vm5074_vm0, %v5073_v0 }
  0xa3   : > { %4645 = vmatpush3.msra.mxu0 %v1483_v28  ;;  %4655 = vmatprep.subr.mxu1 %v5073_v0 }
  0xa4   : > { %4642 = vmatmul.mubr.msk.f32.vlgmr.msra.gmra.mxu1 %vm300_vm1, %v5253_v9  ;;  %4646 = vmatprep.subr.mxu0 %v5073_v0 }
  0xa5   : > { %4656 = vmatpush3.msra.mxu1 %v1487_v29  ;;  %4647 = vmatpush3.msra.mxu0 %v1482_v30 }
  0xa6   : > { %4657 = vmatprep.subr.mxu1 %v5073_v0  ;;  %4648 = vmatprep.subr.mxu0 %v5073_v0 }
  0xa7   : > { %4658 = vmatpush3.msra.mxu1 %v1486_v31  ;;  %4649 = vmatpush3.msra.mxu0 %v1481_v32 }
  0xa8   : > { %4659 = vmatprep.subr.mxu1 %v5073_v0  ;;  %4650 = vmatprep.subr.mxu0 %v5073_v0 }
  0xa9   : > { %4660 = vmatpush3.msra.mxu1 %v1485_v33  ;;  %4651 = vmatpush3.msra.mxu0 %v1480_v34 }
  0xaa   : > { %4652 = vmatprep.mubr.msk.f32.mxu0 %vm5074_vm0, %v5073_v0  ;;  %4661 = vmatprep.subr.mxu1 %v5073_v0 }
  0xab   : > { %4653 = vmatmul.mubr.msk.f32.vlgmr.msra.gmra.mxu0 %vm300_vm1, %v5253_v9  ;;  %4662 = vmatpush3.msra.mxu1 %v1484_v35 }
  0xac   : > { %4663 = vmatprep.mubr.msk.f32.mxu1 %vm5074_vm0, %v5073_v0  ;;  %4666 = vmatprep.subr.mxu0 %v5073_v0 }
  0xad   : > { %4664 = vmatmul.mubr.msk.f32.vlgmr.msra.gmra.mxu1 %vm300_vm1, %v5253_v9  ;;  %4671 = vmatprep.subr.mxu1 %v5073_v0 }
  0xae   : > { %4668 = vmatprep.mubr.msk.f32.mxu0 %vm5074_vm0, %v5073_v0  ;;  %4673 = vmatprep.mubr.msk.f32.mxu1 %vm5074_vm0, %v5073_v0 }
  0xfe   : > { %v370_v36 = vpop.f32.mrf.mxu0 }
  0xff   : > { %v440_v37 = vpop.f32.mrf.mxu1 }
 0x100   : > { %v4412_v38 = vpop.f32.mrf.mxu0 }
 0x101   : > { %v4423_v39 = vpop.f32.mrf.mxu1 }
 0x107   : > { %v510_v40 = vpop.f32.mrf.mxu0 }
 0x109   : > { %v4434_v41 = vpop.f32.mrf.mxu0  ;;  %v580_v42 = vpop.f32.mrf.mxu1 }
 0x10b   : > { %v4445_v43 = vpop.f32.mrf.mxu1 }
 0x111   : > { %v650_v44 = vpop.f32.mrf.mxu0 }
 0x113   : > { %v4456_v45 = vpop.f32.mrf.mxu0  ;;  %v720_v46 = vpop.f32.mrf.mxu1 }
 0x115   : > { %v4467_v9 = vpop.f32.mrf.mxu1 }
 0x11b   : > { %v790_v47 = vpop.f32.mrf.mxu0 }
 0x11d   : > { %v4478_v48 = vpop.f32.mrf.mxu0  ;;  %v860_v49 = vpop.f32.mrf.mxu1 }
 0x11f   : > { %v4489_v50 = vpop.f32.mrf.mxu1 }
 0x126   : > { %v962_v51 = vpop.f32.mrf.mxu0  ;;  %v1032_v52 = vpop.f32.mrf.mxu1 }
 0x127   : > { %4667 = vmatpush3.xpose.msk.msra.mxu0 %vm2048_vm2, %v962_v51  ;;  %4672 = vmatpush3.xpose.msk.msra.mxu1 %vm2048_vm2, %v1032_v52 }
 0x128   : > { %v4500_v53 = vpop.f32.mrf.mxu0  ;;  %v4511_v54 = vpop.f32.mrf.mxu1  ;;  %4676 = vmatprep.subr.mxu0 %v5073_v0  ;;  %4681 = vmatprep.subr.mxu1 %v5073_v0 }
 0x12a   : > { %4669 = vmatmul.mubr.msk.f32.vlgmr.msra.gmra.mxu0 %vm2048_vm2, %v370_v36  ;;  %4674 = vmatmul.mubr.msk.f32.vlgmr.msra.gmra.mxu1 %vm2048_vm2, %v440_v37 }
 0x12b   : > { %4678 = vmatprep.mubr.msk.f32.mxu0 %vm5074_vm0, %v5073_v0  ;;  %4683 = vmatprep.mubr.msk.f32.mxu1 %vm5074_vm0, %v5073_v0 }
 0x130   : > { %v1102_v55 = vpop.f32.mrf.mxu0  ;;  %v1172_v56 = vpop.f32.mrf.mxu1 }
 0x131   : > { %4677 = vmatpush3.xpose.msk.msra.mxu0 %vm2048_vm2, %v1102_v55  ;;  %4682 = vmatpush3.xpose.msk.msra.mxu1 %vm2048_vm2, %v1172_v56 }
 0x132   : > { %v4522_v57 = vpop.f32.mrf.mxu0  ;;  %v4533_v58 = vpop.f32.mrf.mxu1  ;;  %4686 = vmatprep.subr.mxu0 %v5073_v0  ;;  %4691 = vmatprep.subr.mxu1 %v5073_v0 }
 0x134   : > { %4679 = vmatmul.mubr.msk.f32.vlgmr.msra.gmra.mxu0 %vm2048_vm2, %v510_v40  ;;  %4684 = vmatmul.mubr.msk.f32.vlgmr.msra.gmra.mxu1 %vm2048_vm2, %v580_v42 }
 0x135   : > { %4688 = vmatprep.mubr.msk.f32.mxu0 %vm5074_vm0, %v5073_v0  ;;  %4693 = vmatprep.mubr.msk.f32.mxu1 %vm5074_vm0, %v5073_v0 }
 0x13a   : > { %v1242_v59 = vpop.f32.mrf.mxu0  ;;  %v1312_v60 = vpop.f32.mrf.mxu1 }
 0x13b   : > { %4687 = vmatpush3.xpose.msk.msra.mxu0 %vm2048_vm2, %v1242_v59  ;;  %4692 = vmatpush3.xpose.msk.msra.mxu1 %vm2048_vm2, %v1312_v60 }
 0x13c   : > { %v4544_v61 = vpop.f32.mrf.mxu0  ;;  %v4555_v62 = vpop.f32.mrf.mxu1  ;;  %4696 = vmatprep.subr.mxu0 %v5073_v0  ;;  %4701 = vmatprep.subr.mxu1 %v5073_v0 }
 0x13e   : > { %4689 = vmatmul.mubr.msk.f32.vlgmr.msra.gmra.mxu0 %vm2048_vm2, %v650_v44  ;;  %4694 = vmatmul.mubr.msk.f32.vlgmr.msra.gmra.mxu1 %vm2048_vm2, %v720_v46 }
 0x13f   : > { %4698 = vmatprep.mubr.msk.f32.mxu0 %vm5074_vm0, %v5073_v0  ;;  %4703 = vmatprep.mubr.msk.f32.mxu1 %vm5074_vm0, %v5073_v0 }
 0x144   : > { %v1382_v63 = vpop.f32.mrf.mxu0  ;;  %v1452_v1 = vpop.f32.mrf.mxu1 }
 0x145   : > { %4697 = vmatpush3.xpose.msk.msra.mxu0 %vm2048_vm2, %v1382_v63  ;;  %4702 = vmatpush3.xpose.msk.msra.mxu1 %vm2048_vm2, %v1452_v1 }
 0x146   : > { %v4566_v2 = vpop.f32.mrf.mxu0  ;;  %v4577_v3 = vpop.f32.mrf.mxu1  ;;  %4706 = vmatprep.subr.mxu0 %v5073_v0  ;;  %4711 = vmatprep.subr.mxu1 %v5073_v0 }
 0x148   : > { %4699 = vmatmul.mubr.msk.f32.vlgmr.msra.gmra.mxu0 %vm2048_vm2, %v790_v47  ;;  %4704 = vmatmul.mubr.msk.f32.vlgmr.msra.gmra.mxu1 %vm2048_vm2, %v860_v49 }
 0x149   : > { %4708 = vmatprep.mubr.msk.f32.mxu0 %vm5074_vm0, %v5073_v0  ;;  %4713 = vmatprep.mubr.msk.f32.mxu1 %vm5074_vm0, %v5073_v0 }
 0x14d   : > { %v1554_v4 = vpop.f32.mrf.mxu0 }
 0x14e   : > { %4707 = vmatpush3.msra.mxu0 %v1554_v4 }
 0x14f   : > { %v4588_v5 = vpop.f32.mrf.mxu0  ;;  %4716 = vmatprep.subr.mxu0 %v5073_v0 }
 0x150   : > { %v1624_v6 = vpop.f32.mrf.mxu1 }
 0x151   : > { %4712 = vmatpush3.msra.mxu1 %v1624_v6 }
 0x152   : > { %v4599_v7 = vpop.f32.mrf.mxu1  ;;  %4721 = vmatprep.subr.mxu1 %v5073_v0 }
 0x157   : > { %v5749_v8 = vpop.f32.mrf.mxu0 }
 0x159   : > { %v4610_v10 = vpop.f32.mrf.mxu0 }
 0x15a   : > { %v5751_v11 = vpop.f32.mrf.mxu1 }
 0x15c   : > { %v4621_v12 = vpop.f32.mrf.mxu1 }
 0x161   : > { %v5753_v13 = vpop.f32.mrf.mxu0 }
 0x163   : > { %v4632_v14 = vpop.f32.mrf.mxu0 }
 0x164   : > { %v5755_v15 = vpop.f32.mrf.mxu1 }
 0x166   : > { %v4643_v16 = vpop.f32.mrf.mxu1 }
 0x16b   : > { %v5757_v17 = vpop.f32.mrf.mxu0 }
 0x16d   : > { %v5759_v18 = vpop.f32.mrf.mxu1  ;;  %v4654_v19 = vpop.f32.mrf.mxu0 }
 0x16f   : > { %v4665_v20 = vpop.f32.mrf.mxu1 }
 0x1ea   : > { %v2121_v24 = vpop.f32.mrf.mxu0  ;;  %v2197_v25 = vpop.f32.mrf.mxu1 }
 0x1eb   : > { %v2657_v27 = vmul.f32 0.125, %v2121_v24  ;;  %v2658_v28 = vmul.f32 0.125, %v2197_v25 }
 0x1ec   : > { %v4670_v29 = vpop.f32.mrf.mxu0  ;;  %v4675_v30 = vpop.f32.mrf.mxu1 }
 0x1ed   : > { %v2672_v31 = vsel %vm5761_vm3, %v2657_v27, -2.3819763e+38  ;;  %v2673_v33 = vsel %vm5761_vm3, %v2658_v28, -2.3819763e+38 }
 0x1ee   : > { %v2681_v32 = vsel %vm2680_vm4, %v2672_v31, -inf  ;;  %v2684_v34 = vsel %vm2680_vm4, %v2673_v33, -inf }
 0x1ef   : > { %2682 = vmax.xlane.f32.xlu0 %v2681_v32 }
 0x1f3   : > { %2685 = vmax.xlane.f32.xlu0 %v2684_v34 }
 0x1f4   : > { %v2273_v35 = vpop.f32.mrf.mxu0  ;;  %v2349_v36 = vpop.f32.mrf.mxu1 }
 0x1f5   : > { %v2659_v37 = vmul.f32 0.125, %v2273_v35  ;;  %v2660_v38 = vmul.f32 0.125, %v2349_v36 }
 0x1f6   : > { %v4680_v39 = vpop.f32.mrf.mxu0  ;;  %v4685_v40 = vpop.f32.mrf.mxu1 }
 0x1f7   : > { %v2674_v41 = vsel %vm5761_vm3, %v2659_v37, -2.3819763e+38  ;;  %v2675_v43 = vsel %vm5761_vm3, %v2660_v38, -2.3819763e+38 }
 0x1f8   : > { %v2687_v42 = vsel %vm2680_vm4, %v2674_v41, -inf  ;;  %v2690_v44 = vsel %vm2680_vm4, %v2675_v43, -inf }
 0x1f9   : > { %2688 = vmax.xlane.f32.xlu1 %v2687_v42 }
 0x1fd   : > { %2691 = vmax.xlane.f32.xlu1 %v2690_v44 }
 0x1fe   : > { %v2425_v45 = vpop.f32.mrf.mxu0  ;;  %v2501_v46 = vpop.f32.mrf.mxu1 }
 0x1ff   : > { %v2661_v9 = vmul.f32 0.125, %v2425_v45  ;;  %v2662_v47 = vmul.f32 0.125, %v2501_v46 }
 0x200   : > { %v4690_v48 = vpop.f32.mrf.mxu0  ;;  %v4695_v49 = vpop.f32.mrf.mxu1 }
 0x201   : > { %v2677_v50 = vsel %vm5761_vm3, %v2662_v47, -2.3819763e+38  ;;  %v2676_v51 = vsel %vm5761_vm3, %v2661_v9, -2.3819763e+38 }
 0x202   : > { %v2696_v52 = vsel %vm2680_vm4, %v2677_v50, -inf  ;;  %v2693_v53 = vsel %vm2680_vm4, %v2676_v51, -inf }
 0x203   : > { %2697 = vmax.xlane.f32.xlu1 %v2696_v52  ;;  %2694 = vmax.xlane.f32.xlu0 %v2693_v53 }
 0x208   : > { %v2577_v54 = vpop.f32.mrf.mxu0  ;;  %v2653_v55 = vpop.f32.mrf.mxu1 }
 0x209   : > { %v2663_v56 = vmul.f32 0.125, %v2577_v54  ;;  %v2664_v57 = vmul.f32 0.125, %v2653_v55 }
 0x20a   : > { %v4700_v58 = vpop.f32.mrf.mxu0  ;;  %v4705_v59 = vpop.f32.mrf.mxu1 }
 0x20b   : > { %v2679_v60 = vsel %vm5761_vm3, %v2664_v57, -2.3819763e+38  ;;  %v2678_v61 = vsel %vm5761_vm3, %v2663_v56, -2.3819763e+38 }
 0x20c   : > { %v2702_v62 = vsel %vm2680_vm4, %v2679_v60, -inf  ;;  %v2699_v63 = vsel %vm2680_vm4, %v2678_v61, -inf }
 0x20d   : > { %2703 = vmax.xlane.f32.xlu1 %v2702_v62  ;;  %2700 = vmax.xlane.f32.xlu0 %v2699_v63 }
 0x278   : > { %v2683_v1 = vpop.xlane.xlu0 %2682 }
 0x279   : > { %v2705_v2 = vsub.f32 %v2672_v31, %v2683_v1 }
 0x27b   : > { %v2713_v3 = vmul.f32 1.442695, %v2705_v2 }
 0x27c   : > { %v2686_v4 = vpop.xlane.xlu0 %2685 }
 0x27d   : > { %4946 = vpow2.f32 %v2713_v3  ;;  %v2706_v5 = vsub.f32 %v2673_v33, %v2686_v4  ;;  %v3368_v3 = vld [vmem:[%s6169_s4 + $0x78] sm:$0xff]  ;;  %v3367_v4 = vld [vmem:[%s6169_s4 + $0x70] sm:$0xff] }
 0x27f   : > { %v2715_v6 = vmul.f32 1.442695, %v2706_v5  ;;  %v3359_v5 = vld [vmem:[%s6169_s4 + $0x30] sm:$0xff] }
 0x281   : > { %4948 = vpow2.f32 %v2715_v6  ;;  %v3366_v6 = vld [vmem:[%s6169_s4 + $0x68] sm:$0xff] }
 0x282   : > { %v2689_v7 = vpop.xlane.xlu1 %2688 }
 0x283   : > { %v2707_v10 = vsub.f32 %v2674_v41, %v2689_v7  ;;  %v3358_v7 = vld [vmem:[%s6169_s4 + $0x28] sm:$0xff] }
 0x285   : > { %v2717_v12 = vmul.f32 1.442695, %v2707_v10  ;;  %v3365_v10 = vld [vmem:[%s6169_s4 + $0x60] sm:$0xff] }
 0x286   : > { %v2692_v14 = vpop.xlane.xlu1 %2691 }
 0x287   : > { %4950 = vpow2.f32 %v2717_v12  ;;  %v2708_v16 = vsub.f32 %v2675_v43, %v2692_v14  ;;  %v3357_v12 = vld [vmem:[%s6169_s4 + $0x20] sm:$0xff]  ;;  %v3364_v14 = vld [vmem:[%s6169_s4 + $0x58] sm:$0xff] }
 0x289   : > { %v2719_v19 = vmul.f32 1.442695, %v2708_v16  ;;  %v3356_v16 = vld [vmem:[%s6169_s4 + $0x18] sm:$0xff] }
 0x28a   : > { %v4947_v20 = vpop.eup %4946 }
 0x28b   : > { %4952 = vpow2.f32 %v2719_v19  ;;  %v2729_v21 = vsel %vm2680_vm4, %v4947_v20, 0.0  ;;  %v3363_v19 = vld [vmem:[%s6169_s4 + $0x50] sm:$0xff] }
 0x28c   : > { %v2698_v22 = vpop.xlane.xlu1 %2697  ;;  %v2695_v23 = vpop.xlane.xlu0 %2694  ;;  %2730 = vadd.xlane.f32.xlu0 %v2729_v21  ;;  %v3354_v21 = vld [vmem:[%s6169_s4 + $0x8] sm:$0xff] }
 0x28d   : > { %v2710_v24 = vsub.f32 %v2677_v50, %v2698_v22  ;;  %v2709_v25 = vsub.f32 %v2676_v51, %v2695_v23  ;;  %v3353_v22 = vld [vmem:[%s6169_s4] sm:$0xff]  ;;  %v3362_v23 = vld [vmem:[%s6169_s4 + $0x48] sm:$0xff] }
 0x28e   : > { %v4949_v26 = vpop.eup %4948 }
 0x28f   : > { %v2723_v27 = vmul.f32 1.442695, %v2710_v24  ;;  %v2721_v28 = vmul.f32 1.442695, %v2709_v25  ;;  %v2732_v29 = vsel %vm2680_vm4, %v4949_v26, 0.0  ;;  %v3361_v24 = vld [vmem:[%s6169_s4 + $0x40] sm:$0xff] }
 0x290   : > { %2733 = vadd.xlane.f32.xlu1 %v2732_v29  ;;  %v3376_v25 = vld [vmem:[%s6169_s4 + $0xb8] sm:$0xff]  ;;  %v3374_v29 = vld [vmem:[%s6169_s4 + $0xa8] sm:$0xff] }
 0x291   : > { %4954 = vpow2.f32 %v2723_v27  ;;  %v3375_v27 = vld [vmem:[%s6169_s4 + $0xb0] sm:$0xff] }
 0x292   : > { %4956 = vpow2.f32 %v2721_v28 }
 0x294   : > { %v4951_v30 = vpop.eup %4950 }
 0x295   : > { %v2735_v31 = vsel %vm2680_vm4, %v4951_v30, 0.0 }
 0x296   : > { %v2704_v32 = vpop.xlane.xlu1 %2703  ;;  %v2701_v33 = vpop.xlane.xlu0 %2700  ;;  %2736 = vadd.xlane.f32.xlu0 %v2735_v31 }
 0x297   : > { %v2712_v34 = vsub.f32 %v2679_v60, %v2704_v32  ;;  %v2711_v35 = vsub.f32 %v2678_v61, %v2701_v33  ;;  %v3373_v32 = vld [vmem:[%s6169_s4 + $0xa0] sm:$0xff]  ;;  %v3383_v33 = vld [vmem:[%s6169_s4 + $0xf0] sm:$0xff] }
 0x298   : > { %v4953_v36 = vpop.eup %4952 }
 0x299   : > { %v2727_v37 = vmul.f32 1.442695, %v2712_v34  ;;  %v2725_v38 = vmul.f32 1.442695, %v2711_v35  ;;  %v2738_v39 = vsel %vm2680_vm4, %v4953_v36, 0.0  ;;  %v3372_v35 = vld [vmem:[%s6169_s4 + $0x98] sm:$0xff] }
 0x29a   : > { %2739 = vadd.xlane.f32.xlu1 %v2738_v39 }
 0x29b   : > { %4958 = vpow2.f32 %v2727_v37  ;;  %v3371_v37 = vld [vmem:[%s6169_s4 + $0x90] sm:$0xff] }
 0x29c   : > { %4960 = vpow2.f32 %v2725_v38  ;;  %v3381_v38 = vld [vmem:[%s6169_s4 + $0xe0] sm:$0xff] }
 0x29e   : > { %v4955_v40 = vpop.eup %4954 }
 0x29f   : > { %v4957_v41 = vpop.eup %4956  ;;  %v2744_v42 = vsel %vm2680_vm4, %v4955_v40, 0.0 }
 0x2a0   : > { %2745 = vadd.xlane.f32.xlu1 %v2744_v42  ;;  %v2741_v43 = vsel %vm2680_vm4, %v4957_v41, 0.0 }
 0x2a1   : > { %2742 = vadd.xlane.f32.xlu0 %v2741_v43  ;;  %v3369_v43 = vld [vmem:[%s6169_s4 + $0x80] sm:$0xff] }
 0x2a8   : > { %v4959_v44 = vpop.eup %4958 }
 0x2a9   : > { %v4961_v45 = vpop.eup %4960  ;;  %v2750_v46 = vsel %vm2680_vm4, %v4959_v44, 0.0 }
 0x2aa   : > { %2751 = vadd.xlane.f32.xlu1 %v2750_v46  ;;  %v2747_v9 = vsel %vm2680_vm4, %v4961_v45, 0.0  ;;  %v3378_v46 = vld [vmem:[%s6169_s4 + $0xc8] sm:$0xff] }
 0x2ab   : > { %2748 = vadd.xlane.f32.xlu0 %v2747_v9 }
 0x315   : > { %v2731_v47 = vpop.xlane.xlu0 %2730 }
 0x316   : > { %4962 = vrcp.f32 %v2731_v47  ;;  %v3392_v47 = vld [vmem:[%s6169_s4 + $0x138] sm:$0xff] }
 0x319   : > { %v2734_v48 = vpop.xlane.xlu1 %2733 }
 0x31a   : > { %4964 = vrcp.f32 %v2734_v48  ;;  %v3377_v48 = vld [vmem:[%s6169_s4 + $0xc0] sm:$0xff] }
 0x31f   : > { %v2737_v49 = vpop.xlane.xlu0 %2736 }
 0x320   : > { %4966 = vrcp.f32 %v2737_v49  ;;  %v3391_v49 = vld [vmem:[%s6169_s4 + $0x130] sm:$0xff] }
 0x323   : > { %v4963_v50 = vpop.eup %4962  ;;  %v2740_v51 = vpop.xlane.xlu1 %2739 }
 0x324   : > { %4968 = vrcp.f32 %v2740_v51  ;;  %v2761_v52 = vmul.f32 %v4963_v50, %v4947_v20  ;;  %v3355_v20 = vld [vmem:[%s6169_s4 + $0x10] sm:$0xff]  ;;  %v3390_v51 = vld [vmem:[%s6169_s4 + $0x128] sm:$0xff] }
 0x326   : > { %4709 = vmatmul.mubr.msk.f32.vlgmr.msra.gmra.mxu0 %vm2680_vm4, %v2761_v52 }
 0x327   : > { %v4965_v53 = vpop.eup %4964  ;;  %4717 = vmatpush3.msra.mxu0 %v5749_v8  ;;  %4718 = vmatprep.mubr.msk.f32.mxu0 %vm5074_vm0, %v5073_v0 }
 0x328   : > { %v2762_v54 = vmul.f32 %v4965_v53, %v4949_v26  ;;  %4726 = vmatprep.subr.mxu0 %v5073_v0  ;;  %v3400_v53 = vld [vmem:[%s6169_s4 + $0x178] sm:$0xff] }
 0x329   : > { %v2746_v55 = vpop.xlane.xlu1 %2745 }
 0x32a   : > { %4970 = vrcp.f32 %v2746_v55  ;;  %v2743_v56 = vpop.xlane.xlu0 %2742  ;;  %4714 = vmatmul.mubr.msk.f32.vlgmr.msra.gmra.mxu1 %vm2680_vm4, %v2762_v54  ;;  %v3389_v55 = vld [vmem:[%s6169_s4 + $0x120] sm:$0xff] }
 0x32b   : > { %4972 = vrcp.f32 %v2743_v56  ;;  %4722 = vmatpush3.msra.mxu1 %v5751_v11  ;;  %4723 = vmatprep.mubr.msk.f32.mxu1 %vm5074_vm0, %v5073_v0 }
 0x32c   : > { %4731 = vmatprep.subr.mxu1 %v5073_v0 }
 0x32d   : > { %v4967_v8 = vpop.eup %4966 }
 0x32e   : > { %v2763_v57 = vmul.f32 %v4967_v8, %v4951_v30  ;;  %v3384_v30 = vld [vmem:[%s6169_s4 + $0xf8] sm:$0xff]  ;;  %v3399_v8 = vld [vmem:[%s6169_s4 + $0x170] sm:$0xff] }
 0x330   : > { %4719 = vmatmul.mubr.msk.f32.vlgmr.msra.gmra.mxu0 %vm2680_vm4, %v2763_v57  ;;  %v3388_v57 = vld [vmem:[%s6169_s4 + $0x118] sm:$0xff] }
 0x331   : > { %v4969_v58 = vpop.eup %4968  ;;  %4727 = vmatpush3.msra.mxu0 %v5753_v13  ;;  %4728 = vmatprep.mubr.msk.f32.mxu0 %vm5074_vm0, %v5073_v0 }
 0x332   : > { %v2764_v59 = vmul.f32 %v4969_v58, %v4953_v36  ;;  %4736 = vmatprep.subr.mxu0 %v5073_v0  ;;  %v3382_v36 = vld [vmem:[%s6169_s4 + $0xe8] sm:$0xff] }
 0x333   : > { %v2752_v60 = vpop.xlane.xlu1 %2751  ;;  %v3398_v58 = vld [vmem:[%s6169_s4 + $0x168] sm:$0xff] }
 0x334   : > { %4974 = vrcp.f32 %v2752_v60  ;;  %v2749_v11 = vpop.xlane.xlu0 %2748  ;;  %4724 = vmatmul.mubr.msk.f32.vlgmr.msra.gmra.mxu1 %vm2680_vm4, %v2764_v59  ;;  %v3387_v59 = vld [vmem:[%s6169_s4 + $0x110] sm:$0xff]  ;;  %v3397_v60 = vld [vmem:[%s6169_s4 + $0x160] sm:$0xff] }
 0x335   : > { %4976 = vrcp.f32 %v2749_v11  ;;  %4732 = vmatpush3.msra.mxu1 %v5755_v15  ;;  %4733 = vmatprep.mubr.msk.f32.mxu1 %vm5074_vm0, %v5073_v0  ;;  %v3386_v11 = vld [vmem:[%s6169_s4 + $0x108] sm:$0xff] }
 0x336   : > { %4741 = vmatprep.subr.mxu1 %v5073_v0 }
 0x337   : > { %v4971_v13 = vpop.eup %4970 }
 0x338   : > { %v4973_v61 = vpop.eup %4972  ;;  %v2766_v62 = vmul.f32 %v4971_v13, %v4955_v40  ;;  %v3370_v40 = vld [vmem:[%s6169_s4 + $0x88] sm:$0xff]  ;;  %v3396_v13 = vld [vmem:[%s6169_s4 + $0x158] sm:$0xff] }
 0x339   : > { %v2765_v63 = vmul.f32 %v4973_v61, %v4957_v41  ;;  %v3380_v41 = vld [vmem:[%s6169_s4 + $0xd8] sm:$0xff] }
 0x33a   : > { %4734 = vmatmul.mubr.msk.f32.vlgmr.msra.gmra.mxu1 %vm2680_vm4, %v2766_v62  ;;  %v3385_v62 = vld [vmem:[%s6169_s4 + $0x100] sm:$0xff] }
 0x33b   : > { %4729 = vmatmul.mubr.msk.f32.vlgmr.msra.gmra.mxu0 %vm2680_vm4, %v2765_v63  ;;  %4742 = vmatpush3.msra.mxu1 %v5759_v18 }
 0x33c   : > { %4737 = vmatpush3.msra.mxu0 %v5757_v17  ;;  %4738 = vmatprep.mubr.msk.f32.mxu0 %vm5074_vm0, %v5073_v0  ;;  %v3360_v17 = vld [vmem:[%s6169_s4 + $0x38] sm:$0xff] }
 0x33d   : > { %4743 = vmatprep.mubr.msk.f32.mxu1 %vm5074_vm0, %v5073_v0  ;;  %4746 = vmatprep.subr.mxu0 %v5073_v0 }
 0x33e   : > { %4765 = vmatprep.subr.mxu1 %v5073_v0 }
 0x341   : > { %v4975_v15 = vpop.eup %4974 }
 0x342   : > { %v4977_v1 = vpop.eup %4976  ;;  %v2768_v2 = vmul.f32 %v4975_v15, %v4959_v44  ;;  %v3379_v44 = vld [vmem:[%s6169_s4 + $0xd0] sm:$0xff] }
 0x343   : > { %v2767_v18 = vmul.f32 %v4977_v1, %v4961_v45  ;;  %v3395_v15 = vld [vmem:[%s6169_s4 + $0x150] sm:$0xff] }
 0x344   : > { %4744 = vmatmul.mubr.msk.f32.vlgmr.msra.gmra.mxu1 %vm2680_vm4, %v2768_v2 }
 0x345   : > { %4739 = vmatmul.mubr.msk.f32.vlgmr.msra.gmra.mxu0 %vm2680_vm4, %v2767_v18  ;;  %4766 = vmatpush3.msra.mxu1 %v3368_v3  ;;  %v3394_v3 = vld [vmem:[%s6169_s4 + $0x148] sm:$0xff]  ;;  %v3408_v18 = vld [vmem:[%s6169_s4 + $0x1b8] sm:$0xff] }
 0x346   : > { %4747 = vmatpush3.msra.mxu0 %v3360_v17  ;;  %4767 = vmatprep.subr.mxu1 %v5073_v0  ;;  %v3393_v17 = vld [vmem:[%s6169_s4 + $0x140] sm:$0xff] }
 0x347   : > { %4748 = vmatprep.subr.mxu0 %v5073_v0  ;;  %4768 = vmatpush3.msra.mxu1 %v3367_v4  ;;  %v3407_v4 = vld [vmem:[%s6169_s4 + $0x1b0] sm:$0xff] }
 0x348   : > { %4749 = vmatpush3.msra.mxu0 %v3359_v5  ;;  %4769 = vmatprep.subr.mxu1 %v5073_v0  ;;  %v3406_v5 = vld [vmem:[%s6169_s4 + $0x1a8] sm:$0xff] }
 0x349   : > { %4750 = vmatprep.subr.mxu0 %v5073_v0  ;;  %4770 = vmatpush3.msra.mxu1 %v3366_v6  ;;  %v3416_v6 = vld [vmem:[%s6169_s4 + $0x1f8] sm:$0xff] }
 0x34a   : > { %4751 = vmatpush3.msra.mxu0 %v3358_v7  ;;  %4771 = vmatprep.subr.mxu1 %v5073_v0  ;;  %v3405_v7 = vld [vmem:[%s6169_s4 + $0x1a0] sm:$0xff] }
 0x34b   : > { %4752 = vmatprep.subr.mxu0 %v5073_v0  ;;  %4772 = vmatpush3.msra.mxu1 %v3365_v10  ;;  %v3415_v10 = vld [vmem:[%s6169_s4 + $0x1f0] sm:$0xff] }
 0x34c   : > { %4753 = vmatpush3.msra.mxu0 %v3357_v12  ;;  %4773 = vmatprep.subr.mxu1 %v5073_v0  ;;  %v3404_v12 = vld [vmem:[%s6169_s4 + $0x198] sm:$0xff] }
 0x34d   : > { %4754 = vmatprep.subr.mxu0 %v5073_v0  ;;  %4774 = vmatpush3.msra.mxu1 %v3364_v14  ;;  %v3414_v14 = vld [vmem:[%s6169_s4 + $0x1e8] sm:$0xff] }
 0x34e   : > { %4755 = vmatpush3.msra.mxu0 %v3356_v16  ;;  %4775 = vmatprep.subr.mxu1 %v5073_v0  ;;  %v3403_v16 = vld [vmem:[%s6169_s4 + $0x190] sm:$0xff] }
 0x34f   : > { %4756 = vmatprep.subr.mxu0 %v5073_v0  ;;  %4776 = vmatpush3.msra.mxu1 %v3363_v19  ;;  %v3413_v19 = vld [vmem:[%s6169_s4 + $0x1e0] sm:$0xff] }
 0x350   : > { %4757 = vmatpush3.msra.mxu0 %v3355_v20  ;;  %4762 = vmatprep.mubr.msk.f32.mxu0 %vm5074_vm0, %v5073_v0  ;;  %v3402_v20 = vld [vmem:[%s6169_s4 + $0x188] sm:$0xff] }
 0x351   : > { %4758 = vmatprep.subr.mxu0 %v5073_v0  ;;  %4777 = vmatprep.subr.mxu1 %v5073_v0 }
 0x352   : > { %4759 = vmatpush3.msra.mxu0 %v3354_v21  ;;  %4781 = vmatprep.mubr.msk.f32.mxu1 %vm5074_vm0, %v5073_v0  ;;  %v3412_v21 = vld [vmem:[%s6169_s4 + $0x1d8] sm:$0xff] }
 0x353   : > { %4760 = vmatprep.subr.mxu0 %v5073_v0  ;;  %4778 = vmatpush3.msra.mxu1 %v3362_v23  ;;  %v3411_v23 = vld [vmem:[%s6169_s4 + $0x1d0] sm:$0xff] }
 0x354   : > { %4761 = vmatpush3.msra.mxu0 %v3353_v22  ;;  %4779 = vmatprep.subr.mxu1 %v5073_v0  ;;  %v3401_v22 = vld [vmem:[%s6169_s4 + $0x180] sm:$0xff] }
 0x355   : > { %4784 = vmatprep.subr.mxu0 %v5073_v0  ;;  %4780 = vmatpush3.msra.mxu1 %v3361_v24  ;;  %v3410_v24 = vld [vmem:[%s6169_s4 + $0x1c8] sm:$0xff] }
 0x356   : > { %4803 = vmatprep.subr.mxu1 %v5073_v0 }
 0x3e6   : > { %v2838_v26 = vpop.f32.mrf.mxu0 }
 0x3e7   : > { %4763 = vmatmul.mubr.msk.f32.vlgmr.msra.gmra.mxu0 %vm2048_vm2, %v2838_v26 }
 0x3e8   : > { %4785 = vmatpush3.msra.mxu0 %v3376_v25  ;;  %v4710_v28 = vpop.f32.mrf.mxu0  ;;  %4800 = vmatprep.mubr.msk.f32.mxu0 %vm5074_vm0, %v5073_v0  ;;  %v3409_v25 = vld [vmem:[%s6169_s4 + $0x1c0] sm:$0xff] }
 0x3e9   : > { %4786 = vmatprep.subr.mxu0 %v5073_v0 }
 0x3ea   : > { %4787 = vmatpush3.msra.mxu0 %v3375_v27  ;;  %v2911_v31 = vpop.f32.mrf.mxu1 }
 0x3eb   : > { %4788 = vmatprep.subr.mxu0 %v5073_v0  ;;  %4782 = vmatmul.mubr.msk.f32.vlgmr.msra.gmra.mxu1 %vm2048_vm2, %v2911_v31 }
 0x3ec   : > { %4789 = vmatpush3.msra.mxu0 %v3374_v29  ;;  %4804 = vmatpush3.msra.mxu1 %v3384_v30  ;;  %v4715_v34 = vpop.f32.mrf.mxu1 }
 0x3ed   : > { %4790 = vmatprep.subr.mxu0 %v5073_v0  ;;  %4805 = vmatprep.subr.mxu1 %v5073_v0 }
 0x3ee   : > { %4791 = vmatpush3.msra.mxu0 %v3373_v32  ;;  %4806 = vmatpush3.msra.mxu1 %v3383_v33 }
 0x3ef   : > { %4792 = vmatprep.subr.mxu0 %v5073_v0  ;;  %4807 = vmatprep.subr.mxu1 %v5073_v0 }
 0x3f0   : > { %v2984_v39 = vpop.f32.mrf.mxu0  ;;  %4793 = vmatpush3.msra.mxu0 %v3372_v35  ;;  %4808 = vmatpush3.msra.mxu1 %v3382_v36 }
 0x3f1   : > { %4794 = vmatprep.subr.mxu0 %v5073_v0  ;;  %4809 = vmatprep.subr.mxu1 %v5073_v0 }
 0x3f2   : > { %v4720_v42 = vpop.f32.mrf.mxu0  ;;  %4795 = vmatpush3.msra.mxu0 %v3371_v37  ;;  %4810 = vmatpush3.msra.mxu1 %v3381_v38 }
 0x3f3   : > { %4796 = vmatprep.subr.mxu0 %v5073_v0  ;;  %4811 = vmatprep.subr.mxu1 %v5073_v0 }
 0x3f4   : > { %v3057_v45 = vpop.f32.mrf.mxu1  ;;  %4797 = vmatpush3.msra.mxu0 %v3370_v40  ;;  %4812 = vmatpush3.msra.mxu1 %v3380_v41 }
 0x3f5   : > { %4798 = vmatprep.subr.mxu0 %v5073_v0  ;;  %4813 = vmatprep.subr.mxu1 %v5073_v0 }
 0x3f6   : > { %v4725_v9 = vpop.f32.mrf.mxu1  ;;  %4799 = vmatpush3.msra.mxu0 %v3369_v43  ;;  %4814 = vmatpush3.msra.mxu1 %v3379_v44 }
 0x3f7   : > { %4801 = vmatmul.mubr.msk.f32.vlgmr.msra.gmra.mxu0 %vm2048_vm2, %v2984_v39  ;;  %4815 = vmatprep.subr.mxu1 %v5073_v0 }
 0x3f8   : > { %4822 = vmatprep.subr.mxu0 %v5073_v0  ;;  %4816 = vmatpush3.msra.mxu1 %v3378_v46 }
 0x3f9   : > { %4823 = vmatpush3.msra.mxu0 %v3392_v47  ;;  %4817 = vmatprep.subr.mxu1 %v5073_v0 }
 0x3fa   : > { %v5971_v50 = vpop.f32.mrf.mxu1  ;;  %4824 = vmatprep.subr.mxu0 %v5073_v0  ;;  %4818 = vmatpush3.msra.mxu1 %v3377_v48 }
 0x3fb   : > { %v3130_v52 = vpop.f32.mrf.mxu0  ;;  %4819 = vmatprep.mubr.msk.f32.mxu1 %vm5074_vm0, %v5073_v0  ;;  %4825 = vmatpush3.msra.mxu0 %v3391_v49 }
 0x3fc   : > { %v4735_v54 = vpop.f32.mrf.mxu1  ;;  %4820 = vmatmul.mubr.msk.f32.vlgmr.msra.gmra.mxu1 %vm2048_vm2, %v3057_v45  ;;  %4826 = vmatprep.subr.mxu0 %v5073_v0 }
 0x3fd   : > { %v4730_v56 = vpop.f32.mrf.mxu0  ;;  %4841 = vmatprep.subr.mxu1 %v5073_v0  ;;  %4827 = vmatpush3.msra.mxu0 %v3390_v51 }
 0x3fe   : > { %4842 = vmatpush3.msra.mxu1 %v3400_v53  ;;  %4828 = vmatprep.subr.mxu0 %v5073_v0  ;;  %v4173_v53 = vld [vmem:[%s6170_s5] ss:$0 sm:$0xff] }
 0x3ff   : > { %4843 = vmatprep.subr.mxu1 %v5073_v0  ;;  %4829 = vmatpush3.msra.mxu0 %v3389_v55 }
 0x400   : > { %4844 = vmatpush3.msra.mxu1 %v3399_v8  ;;  %4830 = vmatprep.subr.mxu0 %v5073_v0 }
 0x401   : > { %4845 = vmatprep.subr.mxu1 %v5073_v0  ;;  %4831 = vmatpush3.msra.mxu0 %v3388_v57 }
 0x402   : > { %4846 = vmatpush3.msra.mxu1 %v3398_v58  ;;  %4832 = vmatprep.subr.mxu0 %v5073_v0 }
 0x403   : > { %4847 = vmatprep.subr.mxu1 %v5073_v0  ;;  %4833 = vmatpush3.msra.mxu0 %v3387_v59 }
 0x404   : > { %v6015_v61 = vpop.f32.mrf.mxu1  ;;  %4848 = vmatpush3.msra.mxu1 %v3397_v60  ;;  %4834 = vmatprep.subr.mxu0 %v5073_v0 }
 0x405   : > { %v6021_v63 = vpop.f32.mrf.mxu0  ;;  %4849 = vmatprep.subr.mxu1 %v5073_v0  ;;  %4835 = vmatpush3.msra.mxu0 %v3386_v11 }
 0x406   : > { %v4745_v1 = vpop.f32.mrf.mxu1  ;;  %4850 = vmatpush3.msra.mxu1 %v3396_v13  ;;  %4836 = vmatprep.subr.mxu0 %v5073_v0 }
 0x407   : > { %v4740_v2 = vpop.f32.mrf.mxu0  ;;  %4851 = vmatprep.subr.mxu1 %v5073_v0  ;;  %4837 = vmatpush3.msra.mxu0 %v3385_v62 }
 0x408   : > { %4838 = vmatprep.mubr.msk.f32.mxu0 %vm5074_vm0, %v5073_v0  ;;  %4852 = vmatpush3.msra.mxu1 %v3395_v15 }
 0x409   : > { %4839 = vmatmul.mubr.msk.f32.vlgmr.msra.gmra.mxu0 %vm2048_vm2, %v3130_v52  ;;  %4853 = vmatprep.subr.mxu1 %v5073_v0 }
 0x40a   : > { %4860 = vmatprep.subr.mxu0 %v5073_v0  ;;  %4854 = vmatpush3.msra.mxu1 %v3394_v3 }
 0x40b   : > { %4861 = vmatpush3.msra.mxu0 %v3408_v18  ;;  %4855 = vmatprep.subr.mxu1 %v5073_v0 }
 0x40c   : > { %4862 = vmatprep.subr.mxu0 %v5073_v0  ;;  %4856 = vmatpush3.msra.mxu1 %v3393_v17 }
 0x40d   : > { %4857 = vmatprep.mubr.msk.f32.mxu1 %vm5074_vm0, %v5073_v0  ;;  %4863 = vmatpush3.msra.mxu0 %v3407_v4 }
 0x40e   : > { %4858 = vmatmul.mubr.msk.f32.vlgmr.msra.gmra.mxu1 %vm2048_vm2, %v5971_v50  ;;  %4864 = vmatprep.subr.mxu0 %v5073_v0 }
 0x40f   : > { %4879 = vmatprep.subr.mxu1 %v5073_v0  ;;  %4865 = vmatpush3.msra.mxu0 %v3406_v5 }
 0x410   : > { %4880 = vmatpush3.msra.mxu1 %v3416_v6  ;;  %4866 = vmatprep.subr.mxu0 %v5073_v0 }
 0x411   : > { %4881 = vmatprep.subr.mxu1 %v5073_v0  ;;  %4867 = vmatpush3.msra.mxu0 %v3405_v7 }
 0x412   : > { %4882 = vmatpush3.msra.mxu1 %v3415_v10  ;;  %4868 = vmatprep.subr.mxu0 %v5073_v0 }
 0x413   : > { %4883 = vmatprep.subr.mxu1 %v5073_v0  ;;  %4869 = vmatpush3.msra.mxu0 %v3404_v12 }
 0x414   : > { %4884 = vmatpush3.msra.mxu1 %v3414_v14  ;;  %4870 = vmatprep.subr.mxu0 %v5073_v0 }
 0x415   : > { %4885 = vmatprep.subr.mxu1 %v5073_v0  ;;  %4871 = vmatpush3.msra.mxu0 %v3403_v16 }
 0x416   : > { %4886 = vmatpush3.msra.mxu1 %v3413_v19  ;;  %4872 = vmatprep.subr.mxu0 %v5073_v0 }
 0x417   : > { %4887 = vmatprep.subr.mxu1 %v5073_v0  ;;  %4873 = vmatpush3.msra.mxu0 %v3402_v20 }
 0x418   : > { %4888 = vmatpush3.msra.mxu1 %v3412_v21  ;;  %4874 = vmatprep.subr.mxu0 %v5073_v0 }
 0x419   : > { %4889 = vmatprep.subr.mxu1 %v5073_v0  ;;  %4875 = vmatpush3.msra.mxu0 %v3401_v22 }
 0x41a   : > { %4876 = vmatprep.mubr.msk.f32.mxu0 %vm5074_vm0, %v5073_v0  ;;  %4890 = vmatpush3.msra.mxu1 %v3411_v23 }
 0x41b   : > { %4877 = vmatmul.mubr.msk.f32.vlgmr.msra.gmra.mxu0 %vm2048_vm2, %v6021_v63  ;;  %4891 = vmatprep.subr.mxu1 %v5073_v0 }
 0x41c   : > { %4892 = vmatpush3.msra.mxu1 %v3410_v24  ;;  %4895 = vmatprep.mubr.msk.f32.mxu1 %vm5074_vm0, %v5073_v0 }
 0x41d   : > { %4893 = vmatprep.subr.mxu1 %v5073_v0 }
 0x41e   : > { %4894 = vmatpush3.msra.mxu1 %v3409_v25 }
 0x41f   : > { %4896 = vmatmul.mubr.msk.f32.vlgmr.msra.gmra.mxu1 %vm2048_vm2, %v6015_v61 }
 0x4a7   : > { %v3486_v26 = vpop.f32.mrf.mxu0 }
 0x4a8   : > { %v4001_v0 = vsel %vm300_vm1, %v3486_v26, 0.0 }
 0x4a9   : > { %v4764_v27 = vpop.f32.mrf.mxu0 }
 0x4ab   : > { %v3559_v28 = vpop.f32.mrf.mxu1 }
 0x4ac   : > { %v4002_v38 = vsel %vm300_vm1, %v3559_v28, 0.0 }
 0x4ad   : > { %v4783_v29 = vpop.f32.mrf.mxu1  ;;  %v4003_v40 = vadd.f32 %v4002_v38, %v4001_v0 }
 0x4b7   : > { %v3632_v30 = vpop.f32.mrf.mxu0 }
 0x4b8   : > { %v4004_v39 = vsel %vm300_vm1, %v3632_v30, 0.0 }
 0x4b9   : > { %v4802_v31 = vpop.f32.mrf.mxu0  ;;  %v4005_v42 = vadd.f32 %v4004_v39, %v4003_v40 }
 0x4bc   : > { %v3705_v32 = vpop.f32.mrf.mxu1 }
 0x4bd   : > { %v4006_v41 = vsel %vm300_vm1, %v3705_v32, 0.0 }
 0x4be   : > { %v4821_v33 = vpop.f32.mrf.mxu1  ;;  %v4007_v44 = vadd.f32 %v4006_v41, %v4005_v42 }
 0x4c9   : > { %v3778_v34 = vpop.f32.mrf.mxu0 }
 0x4ca   : > { %v4008_v43 = vsel %vm300_vm1, %v3778_v34, 0.0 }
 0x4cb   : > { %v4840_v35 = vpop.f32.mrf.mxu0  ;;  %v4009_v46 = vadd.f32 %v4008_v43, %v4007_v44 }
 0x4ce   : > { %v3851_v36 = vpop.f32.mrf.mxu1 }
 0x4cf   : > { %v4010_v45 = vsel %vm300_vm1, %v3851_v36, 0.0 }
 0x4d0   : > { %v4859_v37 = vpop.f32.mrf.mxu1  ;;  %v4011_v48 = vadd.f32 %v4010_v45, %v4009_v46 }
 0x4db   : > { %v3924_v9 = vpop.f32.mrf.mxu0 }
 0x4dc   : > { %v4012_v47 = vsel %vm300_vm1, %v3924_v9, 0.0 }
 0x4dd   : > { %v4878_v49 = vpop.f32.mrf.mxu0  ;;  %v4013_v50 = vadd.f32 %v4012_v47, %v4011_v48 }
 0x4df   : > { %v3997_v51 = vpop.f32.mrf.mxu1 }
 0x4e0   : > { %v4014_v52 = vsel %vm300_vm1, %v3997_v51, 0.0 }
 0x4e1   : > { %v4015_v54 = vadd.f32 %v4014_v52, %v4013_v50  ;;  %v4897_v55 = vpop.f32.mrf.mxu1 }
 0x4e3   : > { %v4023_v56 = vadd.f32 %v4173_v53, %v4015_v54 }
 0x4e5   : > { %4024 = vst.msk [vmem:[%s266_s29] sm:$0xff] %vm300_vm1, %v4023_v56 }
 0x4e6   : > { %5019 = shalt.err (!%p5016_p10)
}
 0x4e7   : > { %s5020_s11 = scalar_lea.hbm %s4037_s7, 128  ;;  %s5024_s14 = scalar_lea.hbm %s6171_s6, 256 }
 0x4e8   : > { %p5021_p2 = scmp.ne.s32.totalorder %s4037_s7, %s5020_s11  ;;  %p5025_p7 = scmp.lt.s32.totalorder %s4037_s7, %s6171_s6 }
 0x4e9   : > { %p5026_p0 = scmp.lt.s32.totalorder %s5024_s14, %s5020_s11 }
 0x4ea   : > { %p5022_p4 = pnand %p5021_p2, %p6184_p12 }
 0x4eb   : > { %p5027_p6 = por %p5026_p0, %p5025_p7 }
 0x4ec   : > { %p5023_p9 = pneg %p5022_p4 }
 0x4ee   : > { %p5028_p11 = pnand %p5027_p6, %p5023_p9 }
 0x4f0   : > { %5031 = shalt.err (!%p5028_p11)
}
 0x4f1   : > { %4900 = dma.vmem_to_hbm [thread:$0]  (%p6184_p12), %s4040_s16, 128, %s4037_s7, %s4026_s8  }
 0x4f2 PF: > { %s4051_s29 = sand.u32 1, %s5058_s21   ;;  %p6185_p13 = scmp.ne.s32.totalorder %s6177_s10, 0 }
 0x4f3   : > { %p6186_p1 = scmp.ge.s32.totalorder %s5070_s24, 2  ;;  %s4052_s18 = scalar_lea.sflag [#allocation4], %s4051_s29 }
 0x4f5   : > { %p4907_p3 = pnand %p6186_p1, %p6185_p13 }
 0x4f7   : > { %p4908_p5 = pneg %p4907_p3 }
 0x4f9   : > { %5053 = dma.done.wait (%p4908_p5), %s4052_s18, 128  }
 0x4fa   : > { %5055 = vsyncadd (%p4908_p5), %s4052_s18, 4294967168  ;;  %p19_p8 = scmp.ge.s32.totalorder %s5136_s27, 4   ;;  %s6187_s21 = smov %s5062_s22 }
 0x4fb   : > { %s6188_s22 = smov %s5066_s23  ;;  %s6189_s23 = smov %s5148_s30 }
 0x4fc   : > { %s6190_s24 = smov %s5136_s27  ;;  %21 = sbr.rel (!%p19_p8) target bundleno = 5 (0x5), region = 89 }
 0x501   :  { %4057 = vsyncpa [#allocation3], 1 }
 0x502   :  { %4059 = vsyncpa [#allocation3 + $0x1], 1 }
 0x503   :  { %4060 = vsyncpa [#allocation4], 1 }
 0x504   :  { %4062 = vsyncpa [#allocation4 + $0x1], 1 }

</bundles_post_ra>
